<compile_context>
chip_gen: v5e
topology: v5e:2x2
jax: 0.10.0
libtpu: 0.0.40
codegen_flags: <defaults>
</compile_context>

<pallas_src>
import jax
import jax.numpy as jnp
from jax import lax
from jax.experimental import pallas as pl
from jax.experimental.pallas import tpu as pltpu


def _round_up(x, m):
    return ((x + m - 1) // m) * m


def _choose_time_chunk(S, target=128):
    """Largest chunk length <= target that divides S.  (Time cannot be padded:
    extra recurrence steps would corrupt the final hidden state.)"""
    if S <= target:
        return S
    best = 1
    for ts in range(1, target + 1):
        if S % ts == 0:
            best = ts
    return best


# ----------------------------------------------------------------------------
# Kernel: one time-chunk of a stack of L tanh-RNN layers (+ FC head at the end)
# ----------------------------------------------------------------------------
def _make_kernel(Ts, Bp, L, unroll):
    """Ref order:
      inputs : x (Ts*Bp, Ep) chunk, then per layer [w_ih_T (Ip,Hp), w_hh_T (Hp,Hp),
               b (1,Hp)], then fc_w_T (Hp,Op), fc_b (1,Op)
      outputs: out (Bp,Op), hidden (L,Bp,Hp)
      scratch: h_carry (L,Bp,Hp), pre (Ts*Bp,Hp), [act (Ts*Bp,Hp) if L>1]
    """

    def kernel(*refs):
        x_ref = refs[0]
        pos = 1
        layer_refs = []
        for _ in range(L):
            layer_refs.append((refs[pos], refs[pos + 1], refs[pos + 2]))
            pos += 3
        fcw_ref, fcb_ref = refs[pos], refs[pos + 1]
        pos += 2
        out_ref, hid_ref = refs[pos], refs[pos + 1]
        pos += 2
        h_ref = refs[pos]            # (L, Bp, Hp) hidden carry, persists across chunks
        pre_ref = refs[pos + 1]      # (Ts*Bp, Hp) batched input projection
        act_ref = refs[pos + 2] if L > 1 else None   # (Ts*Bp, Hp) inter-layer acts

        c = pl.program_id(0)

        @pl.when(c == 0)
        def _init():                 # init_hidden = zeros
            h_ref[...] = jnp.zeros_like(h_ref)

        for l, (wih_ref, whh_ref, b_ref) in enumerate(layer_refs):
            in_ref = x_ref if l == 0 else act_ref
            is_last_layer = (l == L - 1)

            # (1) Batched input projection for the whole chunk: one large MXU
            #     matmul (Ts*Bp rows) with the fused bias.  This removes one
            #     matmul + one VMEM load + the bias add from the serial chain.
            pre_ref[...] = (
                jnp.dot(in_ref[...], wih_ref[...],
                        preferred_element_type=jnp.float32)
                + b_ref[...])

            # (2) Serial recurrence: only h @ W_hh^T + tanh per step.  W_hh is
            #     read inside the step so no big weight tile is pinned in vregs
            #     across the (partially unrolled) loop.
            def step(t, h_prev, whh_ref=whh_ref, is_last_layer=is_last_layer):
                r = pl.multiple_of(t * Bp, Bp)
                pre_t = pre_ref[pl.ds(r, Bp), :]
                h_new = jnp.tanh(
                    pre_t + jnp.dot(h_prev, whh_ref[...],
                                    preferred_element_type=jnp.float32))
                if not is_last_layer:
                    act_ref[pl.ds(r, Bp), :] = h_new   # feed next layer from VMEM
                return h_new

            h_last = lax.fori_loop(0, Ts, step, h_ref[l], unroll=unroll)
            h_ref[l] = h_last

        # Last chunk: emit final hidden and the FC head on the top layer's hidden
        # (rnn_out[-1] == final hidden of the last layer for a unidirectional RNN).
        @pl.when(c == pl.num_programs(0) - 1)
        def _finalize():
            hid_ref[...] = h_ref[...]
            out_ref[...] = (
                jnp.dot(h_ref[L - 1], fcw_ref[...],
                        preferred_element_type=jnp.float32)
                + fcb_ref[...]).astype(out_ref.dtype)

    return kernel


# ----------------------------------------------------------------------------
# Wrapper: lane-dense padding, pre-transposed weights, pre-summed biases,
#          time-chunked grid with persistent hidden carry.
# ----------------------------------------------------------------------------
def rnn_forward(x_tokens, params, *, time_chunk=None):
    """Eval-mode forward of the RNN module.  x_tokens: (S, B) int32 token ids.
    Returns (out (B, output_size), hidden (n_layers, B, H))."""
    S, B = x_tokens.shape
    w2v = params["w2v"]
    V, E = w2v.shape
    layers = params["rnn_layers"]
    L = len(layers)
    H = layers[0]["w_ih"].shape[0]
    O, fc_in = params["fc_w"].shape
    if fc_in != H:
        raise NotImplementedError(
            "bidirectional=True is not supported by this kernel")

    # Lane-dense, (8,128)-aligned padded dims.
    Bp = _round_up(max(B, 8), 8)
    Ep = _round_up(E, 128)
    Hp = _round_up(H, 128)
    Op = _round_up(O, 128)

    Ts = time_chunk if time_chunk is not None else _choose_time_chunk(S)
    assert S % Ts == 0, "time_chunk must divide the sequence length"
    n_chunks = S // Ts
    unroll = max(1, min(8, Ts))

    # Embedding lookup producing the lane-dense (S*Bp, Ep) input directly:
    # pad the frozen w2v columns once, pad token ids to Bp, gather.
    # (Padded batch rows use token 0; their outputs are sliced off below.)
    w2v_pad = jnp.zeros((V, Ep), jnp.float32).at[:, :E].set(w2v.astype(jnp.float32))
    tok_pad = jnp.zeros((S, Bp), jnp.int32).at[:, :B].set(x_tokens.astype(jnp.int32))
    x_flat = jnp.take(w2v_pad, tok_pad.reshape(-1), axis=0)        # (S*Bp, Ep)

    inputs = [x_flat]
    in_specs = [pl.BlockSpec((Ts * Bp, Ep), lambda c: (c, 0))]
    for l, layer in enumerate(layers):
        in_dim = E if l == 0 else H
        Ip = Ep if l == 0 else Hp
        wih_t = jnp.zeros((Ip, Hp), jnp.float32).at[:in_dim, :H].set(layer["w_ih"].T)
        whh_t = jnp.zeros((Hp, Hp), jnp.float32).at[:H, :H].set(layer["w_hh"].T)
        b = jnp.zeros((1, Hp), jnp.float32).at[0, :H].set(layer["b_ih"] + layer["b_hh"])
        inputs += [wih_t, whh_t, b]
        in_specs += [
            pl.BlockSpec((Ip, Hp), lambda c: (0, 0)),
            pl.BlockSpec((Hp, Hp), lambda c: (0, 0)),
            pl.BlockSpec((1, Hp), lambda c: (0, 0)),
        ]
    fc_w_t = jnp.zeros((Hp, Op), jnp.float32).at[:H, :O].set(params["fc_w"].T)
    fc_b = jnp.zeros((1, Op), jnp.float32).at[0, :O].set(params["fc_b"])
    inputs += [fc_w_t, fc_b]
    in_specs += [
        pl.BlockSpec((Hp, Op), lambda c: (0, 0)),
        pl.BlockSpec((1, Op), lambda c: (0, 0)),
    ]

    out_shapes = (jax.ShapeDtypeStruct((Bp, Op), jnp.float32),
                  jax.ShapeDtypeStruct((L, Bp, Hp), jnp.float32))
    out_specs = [pl.BlockSpec((Bp, Op), lambda c: (0, 0)),
                 pl.BlockSpec((L, Bp, Hp), lambda c: (0, 0, 0))]

    scratch_shapes = [pltpu.VMEM((L, Bp, Hp), jnp.float32),        # hidden carry
                      pltpu.VMEM((Ts * Bp, Hp), jnp.float32)]      # pre-activation
    if L > 1:
        scratch_shapes.append(pltpu.VMEM((Ts * Bp, Hp), jnp.float32))  # inter-layer act

    # Explicit VMEM budget (x chunk double-buffered + weights + outputs + scratch)
    # with headroom; avoids the small scoped defaults and stays under v7x's 64 MiB.
    vmem_need = 2 * Ts * Bp * Ep * 4
    for l in range(L):
        Ip = Ep if l == 0 else Hp
        vmem_need += (Ip * Hp + Hp * Hp + Hp) * 4
    vmem_need += (Hp * Op + Op) * 4
    vmem_need += (Bp * Op + L * Bp * Hp) * 4
    vmem_need += (L * Bp * Hp + (2 if L > 1 else 1) * Ts * Bp * Hp) * 4
    vmem_limit = int(min(max(2 * vmem_need + (2 << 20), 8 << 20), 64 << 20))

    out_pad, hid_pad = pl.pallas_call(
        _make_kernel(Ts, Bp, L, unroll),
        out_shape=out_shapes,
        grid_spec=pltpu.PrefetchScalarGridSpec(
            num_scalar_prefetch=0,
            grid=(n_chunks,),                 # time chunks; hidden carried in VMEM
            in_specs=in_specs,
            out_specs=out_specs,
            scratch_shapes=scratch_shapes),
        compiler_params=pltpu.CompilerParams(
            dimension_semantics=("arbitrary",),
            vmem_limit_bytes=vmem_limit),
    )(*inputs)

    # Padded batch rows (B..Bp) carry tanh(bias)-driven values; always slice.
    out = out_pad[:B, :O]                     # (B, output_size)
    hidden = hid_pad[:, :B, :H]               # (n_layers, B, H)
    return out, hidden


# ----------------------------------------------------------------------------
# Pure-JAX reference (sanity check only)
# ----------------------------------------------------------------------------
def rnn_forward_ref(x_tokens, params):
    embeds = jnp.take(params["w2v"], x_tokens, axis=0)
    h = embeds
    h_finals = []
    for layer in params["rnn_layers"]:
        def step(h_prev, x_t, layer=layer):
            h_new = jnp.tanh(x_t @ layer["w_ih"].T + layer["b_ih"]
                             + h_prev @ layer["w_hh"].T + layer["b_hh"])
            return h_new, h_new
        B = x_tokens.shape[1]
        H = layer["w_ih"].shape[0]
        h_last, outs = jax.lax.scan(step, jnp.zeros((B, H), jnp.float32), h)
        h = outs
        h_finals.append(h_last)
    hidden = jnp.stack(h_finals, axis=0)
    out = h[-1] @ params["fc_w"].T + params["fc_b"]
    return out, hidden


# ----------------------------------------------------------------------------
# Main
# ----------------------------------------------------------------------------
if __name__ == "__main__":
    SEQ, BATCH = 8, 2
    VOCAB, EMB = 20, 16        # w2v_vectors: (vocab, input_size); input_size == EMB
    HIDDEN = 32
    OUTPUT = 4
    N_LAYERS = 2
    BIDIRECTIONAL = False      # module default (True path not implemented)

    key = jax.random.PRNGKey(0)
    keys = jax.random.split(key, 4 + 4 * N_LAYERS)

    bound = 1.0 / (HIDDEN ** 0.5)
    rnn_layers = []
    for l in range(N_LAYERS):
        in_dim = EMB if l == 0 else HIDDEN
        k0, k1, k2, k3 = keys[4 * l:4 * l + 4]
        rnn_layers.append({
            "w_ih": jax.random.uniform(k0, (HIDDEN, in_dim), jnp.float32, -bound, bound),
            "w_hh": jax.random.uniform(k1, (HIDDEN, HIDDEN), jnp.float32, -bound, bound),
            "b_ih": jax.random.uniform(k2, (HIDDEN,), jnp.float32, -bound, bound),
            "b_hh": jax.random.uniform(k3, (HIDDEN,), jnp.float32, -bound, bound),
        })
    kw2v, kfw, kfb, kx = keys[4 * N_LAYERS:]
    params = {
        "w2v": jax.random.normal(kw2v, (VOCAB, EMB), jnp.float32),
        "rnn_layers": rnn_layers,
        "fc_w": jax.random.uniform(kfw, (OUTPUT, HIDDEN * (int(BIDIRECTIONAL) + 1)),
                                   jnp.float32, -bound, bound),
        "fc_b": jax.random.uniform(kfb, (OUTPUT,), jnp.float32, -bound, bound),
    }

    # Token-id input x: (seq, batch) — PyTorch nn.RNN is seq-first.
    x = jax.random.randint(kx, (SEQ, BATCH), 0, VOCAB, dtype=jnp.int32)

    out_ref_, hidden_ref_ = rnn_forward_ref(x, params)

    # Single-chunk path (whole sequence resident in VMEM).
    out1, hid1 = rnn_forward(x, params)
    out1 = jax.block_until_ready(out1)
    hid1 = jax.block_until_ready(hid1)

    # Multi-chunk path (time-chunked grid; hidden carried across grid steps).
    out2, hid2 = rnn_forward(x, params, time_chunk=4)
    out2 = jax.block_until_ready(out2)
    hid2 = jax.block_until_ready(hid2)

    for out, hid in ((out1, hid1), (out2, hid2)):
        assert out.shape == (BATCH, OUTPUT)
        assert hid.shape == (N_LAYERS, BATCH, HIDDEN)
        assert jnp.allclose(out, out_ref_, atol=1e-5), "fc/rnn output mismatch"
        assert jnp.allclose(hid, hidden_ref_, atol=1e-5), "hidden state mismatch"

    print("KERNEL_OK")
</pallas_src>

<mosaic_0001>
module attributes {stable_mosaic.version = 11 : i64} {
  func.func @kernel(%arg0: i32, %arg1: memref<64x128xf32, #tpu.memory_space<vmem>>, %arg2: memref<128x128xf32, #tpu.memory_space<vmem>>, %arg3: memref<128x128xf32, #tpu.memory_space<vmem>>, %arg4: memref<1x128xf32, #tpu.memory_space<vmem>>, %arg5: memref<128x128xf32, #tpu.memory_space<vmem>>, %arg6: memref<128x128xf32, #tpu.memory_space<vmem>>, %arg7: memref<1x128xf32, #tpu.memory_space<vmem>>, %arg8: memref<128x128xf32, #tpu.memory_space<vmem>>, %arg9: memref<1x128xf32, #tpu.memory_space<vmem>>, %arg10: memref<8x128xf32, #tpu.memory_space<vmem>>, %arg11: memref<2x8x128xf32, #tpu.memory_space<vmem>>, %arg12: memref<2x8x128xf32, #tpu.memory_space<vmem>>, %arg13: memref<64x128xf32, #tpu.memory_space<vmem>>, %arg14: memref<64x128xf32, #tpu.memory_space<vmem>>) attributes {dimension_semantics = [#tpu.dimension_semantics<arbitrary>], iteration_bounds = array<i64: 1>, scalar_prefetch = 0 : i64, scratch_operands = 3 : i64, tpu.core_type = #tpu.core_type<tc>, window_params = [{transform_indices = @transform_0, window_bounds = array<i64: 64, 128>}, {pipeline_mode = #tpu.pipeline_mode<synchronous>, transform_indices = @transform_1, window_bounds = array<i64: 128, 128>}, {pipeline_mode = #tpu.pipeline_mode<synchronous>, transform_indices = @transform_2, window_bounds = array<i64: 128, 128>}, {pipeline_mode = #tpu.pipeline_mode<synchronous>, transform_indices = @transform_3, window_bounds = array<i64: 1, 128>}, {pipeline_mode = #tpu.pipeline_mode<synchronous>, transform_indices = @transform_4, window_bounds = array<i64: 128, 128>}, {pipeline_mode = #tpu.pipeline_mode<synchronous>, transform_indices = @transform_5, window_bounds = array<i64: 128, 128>}, {pipeline_mode = #tpu.pipeline_mode<synchronous>, transform_indices = @transform_6, window_bounds = array<i64: 1, 128>}, {pipeline_mode = #tpu.pipeline_mode<synchronous>, transform_indices = @transform_7, window_bounds = array<i64: 128, 128>}, {pipeline_mode = #tpu.pipeline_mode<synchronous>, transform_indices = @transform_8, window_bounds = array<i64: 1, 128>}, {pipeline_mode = #tpu.pipeline_mode<synchronous>, transform_indices = @transform_9, window_bounds = array<i64: 8, 128>}, {pipeline_mode = #tpu.pipeline_mode<synchronous>, transform_indices = @transform_10, window_bounds = array<i64: 2, 8, 128>}]} {
    %c0_i32 = arith.constant 0 : i32
    %0 = arith.cmpi eq, %arg0, %c0_i32 : i32
    %1 = arith.extui %0 : i1 to i32
    %c0_i32_0 = arith.constant 0 : i32
    %2 = arith.cmpi ne, %1, %c0_i32_0 : i32
    scf.if %2 {
      %cst_128 = arith.constant 0.000000e+00 : f32
      %174 = vector.broadcast %cst_128 : f32 to vector<2x8x128xf32>
      %c0_129 = arith.constant 0 : index
      %c0_130 = arith.constant 0 : index
      %c0_131 = arith.constant 0 : index
      %175 = vector.load %arg12[%c0_129, %c0_130, %c0_131] : memref<2x8x128xf32, #tpu.memory_space<vmem>>, vector<2x8x128xf32>
      tpu.vector_store %arg12[%c0_129, %c0_130, %c0_131], %174 {strides = array<i32>} : memref<2x8x128xf32, #tpu.memory_space<vmem>>, vector<2x8x128xf32>,
    } else {
    }
    %c0 = arith.constant 0 : index
    %c0_1 = arith.constant 0 : index
    %3 = vector.load %arg1[%c0, %c0_1] : memref<64x128xf32, #tpu.memory_space<vmem>>, vector<64x128xf32>
    %c0_2 = arith.constant 0 : index
    %c0_3 = arith.constant 0 : index
    %4 = vector.load %arg2[%c0_2, %c0_3] : memref<128x128xf32, #tpu.memory_space<vmem>>, vector<128x128xf32>
    %cst = arith.constant dense<0.000000e+00> : vector<64x128xf32>
    %5 = tpu.matmul %3, %4, %cst {dimension_numbers = #tpu.dot_dimension_numbers<[1], [0], [0], [1], [0, 0, 1, 1], [], []>} : vector<64x128xf32>, vector<128x128xf32>, vector<64x128xf32> -> vector<64x128xf32>
    %c0_4 = arith.constant 0 : index
    %c0_5 = arith.constant 0 : index
    %6 = vector.load %arg4[%c0_4, %c0_5] : memref<1x128xf32, #tpu.memory_space<vmem>>, vector<1x128xf32>
    %7 = vector.broadcast %6 : vector<1x128xf32> to vector<64x128xf32>
    %8 = arith.addf %5, %7 : vector<64x128xf32>
    %c0_6 = arith.constant 0 : index
    %c0_7 = arith.constant 0 : index
    %9 = vector.load %arg13[%c0_6, %c0_7] : memref<64x128xf32, #tpu.memory_space<vmem>>, vector<64x128xf32>
    tpu.vector_store %arg13[%c0_6, %c0_7], %8 {strides = array<i32>} : memref<64x128xf32, #tpu.memory_space<vmem>>, vector<64x128xf32>,
    %c0_8 = arith.constant 0 : index
    %c0_9 = arith.constant 0 : index
    %c0_10 = arith.constant 0 : index
    %10 = vector.load %arg12[%c0_8, %c0_9, %c0_10] : memref<2x8x128xf32, #tpu.memory_space<vmem>>, vector<1x8x128xf32>
    %11 = vector.shape_cast %10 : vector<1x8x128xf32> to vector<8x128xf32>
    %c0_i32_11 = arith.constant 0 : i32
    %c8_i32 = arith.constant 8 : i32
    %12 = arith.muli %c0_i32_11, %c8_i32 : i32
    %13 = tpu.assume_multiple %12, 8 : i32
    %14 = arith.index_cast %13 : i32 to index
    %c0_12 = arith.constant 0 : index
    %15 = vector.load %arg13[%14, %c0_12] : memref<64x128xf32, #tpu.memory_space<vmem>>, vector<8x128xf32>
    %c0_13 = arith.constant 0 : index
    %c0_14 = arith.constant 0 : index
    %16 = vector.load %arg3[%c0_13, %c0_14] : memref<128x128xf32, #tpu.memory_space<vmem>>, vector<128x128xf32>
    %cst_15 = arith.constant dense<0.000000e+00> : vector<8x128xf32>
    %17 = tpu.matmul %11, %16, %cst_15 {dimension_numbers = #tpu.dot_dimension_numbers<[1], [0], [0], [1], [0, 0, 1, 1], [], []>} : vector<8x128xf32>, vector<128x128xf32>, vector<8x128xf32> -> vector<8x128xf32>
    %18 = arith.addf %15, %17 : vector<8x128xf32>
    %19 = math.tanh %18 : vector<8x128xf32>
    %20 = arith.index_cast %13 : i32 to index
    %c0_16 = arith.constant 0 : index
    %21 = vector.load %arg14[%20, %c0_16] : memref<64x128xf32, #tpu.memory_space<vmem>>, vector<8x128xf32>
    tpu.vector_store %arg14[%20, %c0_16], %19 {strides = array<i32>} : memref<64x128xf32, #tpu.memory_space<vmem>>, vector<8x128xf32>,
    %c1_i32 = arith.constant 1 : i32
    %c8_i32_17 = arith.constant 8 : i32
    %22 = arith.muli %c1_i32, %c8_i32_17 : i32
    %23 = tpu.assume_multiple %22, 8 : i32
    %24 = arith.index_cast %23 : i32 to index
    %c0_18 = arith.constant 0 : index
    %25 = vector.load %arg13[%24, %c0_18] : memref<64x128xf32, #tpu.memory_space<vmem>>, vector<8x128xf32>
    %c0_19 = arith.constant 0 : index
    %c0_20 = arith.constant 0 : index
    %26 = vector.load %arg3[%c0_19, %c0_20] : memref<128x128xf32, #tpu.memory_space<vmem>>, vector<128x128xf32>
    %cst_21 = arith.constant dense<0.000000e+00> : vector<8x128xf32>
    %27 = tpu.matmul %19, %26, %cst_21 {dimension_numbers = #tpu.dot_dimension_numbers<[1], [0], [0], [1], [0, 0, 1, 1], [], []>} : vector<8x128xf32>, vector<128x128xf32>, vector<8x128xf32> -> vector<8x128xf32>
    %28 = arith.addf %25, %27 : vector<8x128xf32>
    %29 = math.tanh %28 : vector<8x128xf32>
    %30 = arith.index_cast %23 : i32 to index
    %c0_22 = arith.constant 0 : index
    %31 = vector.load %arg14[%30, %c0_22] : memref<64x128xf32, #tpu.memory_space<vmem>>, vector<8x128xf32>
    tpu.vector_store %arg14[%30, %c0_22], %29 {strides = array<i32>} : memref<64x128xf32, #tpu.memory_space<vmem>>, vector<8x128xf32>,
    %c2_i32 = arith.constant 2 : i32
    %c8_i32_23 = arith.constant 8 : i32
    %32 = arith.muli %c2_i32, %c8_i32_23 : i32
    %33 = tpu.assume_multiple %32, 8 : i32
    %34 = arith.index_cast %33 : i32 to index
    %c0_24 = arith.constant 0 : index
    %35 = vector.load %arg13[%34, %c0_24] : memref<64x128xf32, #tpu.memory_space<vmem>>, vector<8x128xf32>
    %c0_25 = arith.constant 0 : index
    %c0_26 = arith.constant 0 : index
    %36 = vector.load %arg3[%c0_25, %c0_26] : memref<128x128xf32, #tpu.memory_space<vmem>>, vector<128x128xf32>
    %cst_27 = arith.constant dense<0.000000e+00> : vector<8x128xf32>
    %37 = tpu.matmul %29, %36, %cst_27 {dimension_numbers = #tpu.dot_dimension_numbers<[1], [0], [0], [1], [0, 0, 1, 1], [], []>} : vector<8x128xf32>, vector<128x128xf32>, vector<8x128xf32> -> vector<8x128xf32>
    %38 = arith.addf %35, %37 : vector<8x128xf32>
    %39 = math.tanh %38 : vector<8x128xf32>
    %40 = arith.index_cast %33 : i32 to index
    %c0_28 = arith.constant 0 : index
    %41 = vector.load %arg14[%40, %c0_28] : memref<64x128xf32, #tpu.memory_space<vmem>>, vector<8x128xf32>
    tpu.vector_store %arg14[%40, %c0_28], %39 {strides = array<i32>} : memref<64x128xf32, #tpu.memory_space<vmem>>, vector<8x128xf32>,
    %c3_i32 = arith.constant 3 : i32
    %c8_i32_29 = arith.constant 8 : i32
    %42 = arith.muli %c3_i32, %c8_i32_29 : i32
    %43 = tpu.assume_multiple %42, 8 : i32
    %44 = arith.index_cast %43 : i32 to index
    %c0_30 = arith.constant 0 : index
    %45 = vector.load %arg13[%44, %c0_30] : memref<64x128xf32, #tpu.memory_space<vmem>>, vector<8x128xf32>
    %c0_31 = arith.constant 0 : index
    %c0_32 = arith.constant 0 : index
    %46 = vector.load %arg3[%c0_31, %c0_32] : memref<128x128xf32, #tpu.memory_space<vmem>>, vector<128x128xf32>
    %cst_33 = arith.constant dense<0.000000e+00> : vector<8x128xf32>
    %47 = tpu.matmul %39, %46, %cst_33 {dimension_numbers = #tpu.dot_dimension_numbers<[1], [0], [0], [1], [0, 0, 1, 1], [], []>} : vector<8x128xf32>, vector<128x128xf32>, vector<8x128xf32> -> vector<8x128xf32>
    %48 = arith.addf %45, %47 : vector<8x128xf32>
    %49 = math.tanh %48 : vector<8x128xf32>
    %50 = arith.index_cast %43 : i32 to index
    %c0_34 = arith.constant 0 : index
    %51 = vector.load %arg14[%50, %c0_34] : memref<64x128xf32, #tpu.memory_space<vmem>>, vector<8x128xf32>
    tpu.vector_store %arg14[%50, %c0_34], %49 {strides = array<i32>} : memref<64x128xf32, #tpu.memory_space<vmem>>, vector<8x128xf32>,
    %c4_i32 = arith.constant 4 : i32
    %c8_i32_35 = arith.constant 8 : i32
    %52 = arith.muli %c4_i32, %c8_i32_35 : i32
    %53 = tpu.assume_multiple %52, 8 : i32
    %54 = arith.index_cast %53 : i32 to index
    %c0_36 = arith.constant 0 : index
    %55 = vector.load %arg13[%54, %c0_36] : memref<64x128xf32, #tpu.memory_space<vmem>>, vector<8x128xf32>
    %c0_37 = arith.constant 0 : index
    %c0_38 = arith.constant 0 : index
    %56 = vector.load %arg3[%c0_37, %c0_38] : memref<128x128xf32, #tpu.memory_space<vmem>>, vector<128x128xf32>
    %cst_39 = arith.constant dense<0.000000e+00> : vector<8x128xf32>
    %57 = tpu.matmul %49, %56, %cst_39 {dimension_numbers = #tpu.dot_dimension_numbers<[1], [0], [0], [1], [0, 0, 1, 1], [], []>} : vector<8x128xf32>, vector<128x128xf32>, vector<8x128xf32> -> vector<8x128xf32>
    %58 = arith.addf %55, %57 : vector<8x128xf32>
    %59 = math.tanh %58 : vector<8x128xf32>
    %60 = arith.index_cast %53 : i32 to index
    %c0_40 = arith.constant 0 : index
    %61 = vector.load %arg14[%60, %c0_40] : memref<64x128xf32, #tpu.memory_space<vmem>>, vector<8x128xf32>
    tpu.vector_store %arg14[%60, %c0_40], %59 {strides = array<i32>} : memref<64x128xf32, #tpu.memory_space<vmem>>, vector<8x128xf32>,
    %c5_i32 = arith.constant 5 : i32
    %c8_i32_41 = arith.constant 8 : i32
    %62 = arith.muli %c5_i32, %c8_i32_41 : i32
    %63 = tpu.assume_multiple %62, 8 : i32
    %64 = arith.index_cast %63 : i32 to index
    %c0_42 = arith.constant 0 : index
    %65 = vector.load %arg13[%64, %c0_42] : memref<64x128xf32, #tpu.memory_space<vmem>>, vector<8x128xf32>
    %c0_43 = arith.constant 0 : index
    %c0_44 = arith.constant 0 : index
    %66 = vector.load %arg3[%c0_43, %c0_44] : memref<128x128xf32, #tpu.memory_space<vmem>>, vector<128x128xf32>
    %cst_45 = arith.constant dense<0.000000e+00> : vector<8x128xf32>
    %67 = tpu.matmul %59, %66, %cst_45 {dimension_numbers = #tpu.dot_dimension_numbers<[1], [0], [0], [1], [0, 0, 1, 1], [], []>} : vector<8x128xf32>, vector<128x128xf32>, vector<8x128xf32> -> vector<8x128xf32>
    %68 = arith.addf %65, %67 : vector<8x128xf32>
    %69 = math.tanh %68 : vector<8x128xf32>
    %70 = arith.index_cast %63 : i32 to index
    %c0_46 = arith.constant 0 : index
    %71 = vector.load %arg14[%70, %c0_46] : memref<64x128xf32, #tpu.memory_space<vmem>>, vector<8x128xf32>
    tpu.vector_store %arg14[%70, %c0_46], %69 {strides = array<i32>} : memref<64x128xf32, #tpu.memory_space<vmem>>, vector<8x128xf32>,
    %c6_i32 = arith.constant 6 : i32
    %c8_i32_47 = arith.constant 8 : i32
    %72 = arith.muli %c6_i32, %c8_i32_47 : i32
    %73 = tpu.assume_multiple %72, 8 : i32
    %74 = arith.index_cast %73 : i32 to index
    %c0_48 = arith.constant 0 : index
    %75 = vector.load %arg13[%74, %c0_48] : memref<64x128xf32, #tpu.memory_space<vmem>>, vector<8x128xf32>
    %c0_49 = arith.constant 0 : index
    %c0_50 = arith.constant 0 : index
    %76 = vector.load %arg3[%c0_49, %c0_50] : memref<128x128xf32, #tpu.memory_space<vmem>>, vector<128x128xf32>
    %cst_51 = arith.constant dense<0.000000e+00> : vector<8x128xf32>
    %77 = tpu.matmul %69, %76, %cst_51 {dimension_numbers = #tpu.dot_dimension_numbers<[1], [0], [0], [1], [0, 0, 1, 1], [], []>} : vector<8x128xf32>, vector<128x128xf32>, vector<8x128xf32> -> vector<8x128xf32>
    %78 = arith.addf %75, %77 : vector<8x128xf32>
    %79 = math.tanh %78 : vector<8x128xf32>
    %80 = arith.index_cast %73 : i32 to index
    %c0_52 = arith.constant 0 : index
    %81 = vector.load %arg14[%80, %c0_52] : memref<64x128xf32, #tpu.memory_space<vmem>>, vector<8x128xf32>
    tpu.vector_store %arg14[%80, %c0_52], %79 {strides = array<i32>} : memref<64x128xf32, #tpu.memory_space<vmem>>, vector<8x128xf32>,
    %c7_i32 = arith.constant 7 : i32
    %c8_i32_53 = arith.constant 8 : i32
    %82 = arith.muli %c7_i32, %c8_i32_53 : i32
    %83 = tpu.assume_multiple %82, 8 : i32
    %84 = arith.index_cast %83 : i32 to index
    %c0_54 = arith.constant 0 : index
    %85 = vector.load %arg13[%84, %c0_54] : memref<64x128xf32, #tpu.memory_space<vmem>>, vector<8x128xf32>
    %c0_55 = arith.constant 0 : index
    %c0_56 = arith.constant 0 : index
    %86 = vector.load %arg3[%c0_55, %c0_56] : memref<128x128xf32, #tpu.memory_space<vmem>>, vector<128x128xf32>
    %cst_57 = arith.constant dense<0.000000e+00> : vector<8x128xf32>
    %87 = tpu.matmul %79, %86, %cst_57 {dimension_numbers = #tpu.dot_dimension_numbers<[1], [0], [0], [1], [0, 0, 1, 1], [], []>} : vector<8x128xf32>, vector<128x128xf32>, vector<8x128xf32> -> vector<8x128xf32>
    %88 = arith.addf %85, %87 : vector<8x128xf32>
    %89 = math.tanh %88 : vector<8x128xf32>
    %90 = arith.index_cast %83 : i32 to index
    %c0_58 = arith.constant 0 : index
    %91 = vector.load %arg14[%90, %c0_58] : memref<64x128xf32, #tpu.memory_space<vmem>>, vector<8x128xf32>
    tpu.vector_store %arg14[%90, %c0_58], %89 {strides = array<i32>} : memref<64x128xf32, #tpu.memory_space<vmem>>, vector<8x128xf32>,
    %c8_i32_59 = arith.constant 8 : i32
    %c0_60 = arith.constant 0 : index
    %c0_61 = arith.constant 0 : index
    %c0_62 = arith.constant 0 : index
    %92 = vector.load %arg12[%c0_60, %c0_61, %c0_62] : memref<2x8x128xf32, #tpu.memory_space<vmem>>, vector<1x8x128xf32>
    %93 = vector.shape_cast %92 : vector<1x8x128xf32> to vector<8x128xf32>
    %94 = vector.shape_cast %89 : vector<8x128xf32> to vector<1x8x128xf32>
    tpu.vector_store %arg12[%c0_60, %c0_61, %c0_62], %94 {strides = array<i32>} : memref<2x8x128xf32, #tpu.memory_space<vmem>>, vector<1x8x128xf32>,
    %c0_63 = arith.constant 0 : index
    %c0_64 = arith.constant 0 : index
    %95 = vector.load %arg14[%c0_63, %c0_64] : memref<64x128xf32, #tpu.memory_space<vmem>>, vector<64x128xf32>
    %c0_65 = arith.constant 0 : index
    %c0_66 = arith.constant 0 : index
    %96 = vector.load %arg5[%c0_65, %c0_66] : memref<128x128xf32, #tpu.memory_space<vmem>>, vector<128x128xf32>
    %cst_67 = arith.constant dense<0.000000e+00> : vector<64x128xf32>
    %97 = tpu.matmul %95, %96, %cst_67 {dimension_numbers = #tpu.dot_dimension_numbers<[1], [0], [0], [1], [0, 0, 1, 1], [], []>} : vector<64x128xf32>, vector<128x128xf32>, vector<64x128xf32> -> vector<64x128xf32>
    %c0_68 = arith.constant 0 : index
    %c0_69 = arith.constant 0 : index
    %98 = vector.load %arg7[%c0_68, %c0_69] : memref<1x128xf32, #tpu.memory_space<vmem>>, vector<1x128xf32>
    %99 = vector.broadcast %98 : vector<1x128xf32> to vector<64x128xf32>
    %100 = arith.addf %97, %99 : vector<64x128xf32>
    %c0_70 = arith.constant 0 : index
    %c0_71 = arith.constant 0 : index
    %101 = vector.load %arg13[%c0_70, %c0_71] : memref<64x128xf32, #tpu.memory_space<vmem>>, vector<64x128xf32>
    tpu.vector_store %arg13[%c0_70, %c0_71], %100 {strides = array<i32>} : memref<64x128xf32, #tpu.memory_space<vmem>>, vector<64x128xf32>,
    %c1 = arith.constant 1 : index
    %c0_72 = arith.constant 0 : index
    %c0_73 = arith.constant 0 : index
    %102 = vector.load %arg12[%c1, %c0_72, %c0_73] : memref<2x8x128xf32, #tpu.memory_space<vmem>>, vector<1x8x128xf32>
    %103 = vector.shape_cast %102 : vector<1x8x128xf32> to vector<8x128xf32>
    %c0_i32_74 = arith.constant 0 : i32
    %c8_i32_75 = arith.constant 8 : i32
    %104 = arith.muli %c0_i32_74, %c8_i32_75 : i32
    %105 = tpu.assume_multiple %104, 8 : i32
    %106 = arith.index_cast %105 : i32 to index
    %c0_76 = arith.constant 0 : index
    %107 = vector.load %arg13[%106, %c0_76] : memref<64x128xf32, #tpu.memory_space<vmem>>, vector<8x128xf32>
    %c0_77 = arith.constant 0 : index
    %c0_78 = arith.constant 0 : index
    %108 = vector.load %arg6[%c0_77, %c0_78] : memref<128x128xf32, #tpu.memory_space<vmem>>, vector<128x128xf32>
    %cst_79 = arith.constant dense<0.000000e+00> : vector<8x128xf32>
    %109 = tpu.matmul %103, %108, %cst_79 {dimension_numbers = #tpu.dot_dimension_numbers<[1], [0], [0], [1], [0, 0, 1, 1], [], []>} : vector<8x128xf32>, vector<128x128xf32>, vector<8x128xf32> -> vector<8x128xf32>
    %110 = arith.addf %107, %109 : vector<8x128xf32>
    %111 = math.tanh %110 : vector<8x128xf32>
    %c1_i32_80 = arith.constant 1 : i32
    %c8_i32_81 = arith.constant 8 : i32
    %112 = arith.muli %c1_i32_80, %c8_i32_81 : i32
    %113 = tpu.assume_multiple %112, 8 : i32
    %114 = arith.index_cast %113 : i32 to index
    %c0_82 = arith.constant 0 : index
    %115 = vector.load %arg13[%114, %c0_82] : memref<64x128xf32, #tpu.memory_space<vmem>>, vector<8x128xf32>
    %c0_83 = arith.constant 0 : index
    %c0_84 = arith.constant 0 : index
    %116 = vector.load %arg6[%c0_83, %c0_84] : memref<128x128xf32, #tpu.memory_space<vmem>>, vector<128x128xf32>
    %cst_85 = arith.constant dense<0.000000e+00> : vector<8x128xf32>
    %117 = tpu.matmul %111, %116, %cst_85 {dimension_numbers = #tpu.dot_dimension_numbers<[1], [0], [0], [1], [0, 0, 1, 1], [], []>} : vector<8x128xf32>, vector<128x128xf32>, vector<8x128xf32> -> vector<8x128xf32>
    %118 = arith.addf %115, %117 : vector<8x128xf32>
    %119 = math.tanh %118 : vector<8x128xf32>
    %c2_i32_86 = arith.constant 2 : i32
    %c8_i32_87 = arith.constant 8 : i32
    %120 = arith.muli %c2_i32_86, %c8_i32_87 : i32
    %121 = tpu.assume_multiple %120, 8 : i32
    %122 = arith.index_cast %121 : i32 to index
    %c0_88 = arith.constant 0 : index
    %123 = vector.load %arg13[%122, %c0_88] : memref<64x128xf32, #tpu.memory_space<vmem>>, vector<8x128xf32>
    %c0_89 = arith.constant 0 : index
    %c0_90 = arith.constant 0 : index
    %124 = vector.load %arg6[%c0_89, %c0_90] : memref<128x128xf32, #tpu.memory_space<vmem>>, vector<128x128xf32>
    %cst_91 = arith.constant dense<0.000000e+00> : vector<8x128xf32>
    %125 = tpu.matmul %119, %124, %cst_91 {dimension_numbers = #tpu.dot_dimension_numbers<[1], [0], [0], [1], [0, 0, 1, 1], [], []>} : vector<8x128xf32>, vector<128x128xf32>, vector<8x128xf32> -> vector<8x128xf32>
    %126 = arith.addf %123, %125 : vector<8x128xf32>
    %127 = math.tanh %126 : vector<8x128xf32>
    %c3_i32_92 = arith.constant 3 : i32
    %c8_i32_93 = arith.constant 8 : i32
    %128 = arith.muli %c3_i32_92, %c8_i32_93 : i32
    %129 = tpu.assume_multiple %128, 8 : i32
    %130 = arith.index_cast %129 : i32 to index
    %c0_94 = arith.constant 0 : index
    %131 = vector.load %arg13[%130, %c0_94] : memref<64x128xf32, #tpu.memory_space<vmem>>, vector<8x128xf32>
    %c0_95 = arith.constant 0 : index
    %c0_96 = arith.constant 0 : index
    %132 = vector.load %arg6[%c0_95, %c0_96] : memref<128x128xf32, #tpu.memory_space<vmem>>, vector<128x128xf32>
    %cst_97 = arith.constant dense<0.000000e+00> : vector<8x128xf32>
    %133 = tpu.matmul %127, %132, %cst_97 {dimension_numbers = #tpu.dot_dimension_numbers<[1], [0], [0], [1], [0, 0, 1, 1], [], []>} : vector<8x128xf32>, vector<128x128xf32>, vector<8x128xf32> -> vector<8x128xf32>
    %134 = arith.addf %131, %133 : vector<8x128xf32>
    %135 = math.tanh %134 : vector<8x128xf32>
    %c4_i32_98 = arith.constant 4 : i32
    %c8_i32_99 = arith.constant 8 : i32
    %136 = arith.muli %c4_i32_98, %c8_i32_99 : i32
    %137 = tpu.assume_multiple %136, 8 : i32
    %138 = arith.index_cast %137 : i32 to index
    %c0_100 = arith.constant 0 : index
    %139 = vector.load %arg13[%138, %c0_100] : memref<64x128xf32, #tpu.memory_space<vmem>>, vector<8x128xf32>
    %c0_101 = arith.constant 0 : index
    %c0_102 = arith.constant 0 : index
    %140 = vector.load %arg6[%c0_101, %c0_102] : memref<128x128xf32, #tpu.memory_space<vmem>>, vector<128x128xf32>
    %cst_103 = arith.constant dense<0.000000e+00> : vector<8x128xf32>
    %141 = tpu.matmul %135, %140, %cst_103 {dimension_numbers = #tpu.dot_dimension_numbers<[1], [0], [0], [1], [0, 0, 1, 1], [], []>} : vector<8x128xf32>, vector<128x128xf32>, vector<8x128xf32> -> vector<8x128xf32>
    %142 = arith.addf %139, %141 : vector<8x128xf32>
    %143 = math.tanh %142 : vector<8x128xf32>
    %c5_i32_104 = arith.constant 5 : i32
    %c8_i32_105 = arith.constant 8 : i32
    %144 = arith.muli %c5_i32_104, %c8_i32_105 : i32
    %145 = tpu.assume_multiple %144, 8 : i32
    %146 = arith.index_cast %145 : i32 to index
    %c0_106 = arith.constant 0 : index
    %147 = vector.load %arg13[%146, %c0_106] : memref<64x128xf32, #tpu.memory_space<vmem>>, vector<8x128xf32>
    %c0_107 = arith.constant 0 : index
    %c0_108 = arith.constant 0 : index
    %148 = vector.load %arg6[%c0_107, %c0_108] : memref<128x128xf32, #tpu.memory_space<vmem>>, vector<128x128xf32>
    %cst_109 = arith.constant dense<0.000000e+00> : vector<8x128xf32>
    %149 = tpu.matmul %143, %148, %cst_109 {dimension_numbers = #tpu.dot_dimension_numbers<[1], [0], [0], [1], [0, 0, 1, 1], [], []>} : vector<8x128xf32>, vector<128x128xf32>, vector<8x128xf32> -> vector<8x128xf32>
    %150 = arith.addf %147, %149 : vector<8x128xf32>
    %151 = math.tanh %150 : vector<8x128xf32>
    %c6_i32_110 = arith.constant 6 : i32
    %c8_i32_111 = arith.constant 8 : i32
    %152 = arith.muli %c6_i32_110, %c8_i32_111 : i32
    %153 = tpu.assume_multiple %152, 8 : i32
    %154 = arith.index_cast %153 : i32 to index
    %c0_112 = arith.constant 0 : index
    %155 = vector.load %arg13[%154, %c0_112] : memref<64x128xf32, #tpu.memory_space<vmem>>, vector<8x128xf32>
    %c0_113 = arith.constant 0 : index
    %c0_114 = arith.constant 0 : index
    %156 = vector.load %arg6[%c0_113, %c0_114] : memref<128x128xf32, #tpu.memory_space<vmem>>, vector<128x128xf32>
    %cst_115 = arith.constant dense<0.000000e+00> : vector<8x128xf32>
    %157 = tpu.matmul %151, %156, %cst_115 {dimension_numbers = #tpu.dot_dimension_numbers<[1], [0], [0], [1], [0, 0, 1, 1], [], []>} : vector<8x128xf32>, vector<128x128xf32>, vector<8x128xf32> -> vector<8x128xf32>
    %158 = arith.addf %155, %157 : vector<8x128xf32>
    %159 = math.tanh %158 : vector<8x128xf32>
    %c7_i32_116 = arith.constant 7 : i32
    %c8_i32_117 = arith.constant 8 : i32
    %160 = arith.muli %c7_i32_116, %c8_i32_117 : i32
    %161 = tpu.assume_multiple %160, 8 : i32
    %162 = arith.index_cast %161 : i32 to index
    %c0_118 = arith.constant 0 : index
    %163 = vector.load %arg13[%162, %c0_118] : memref<64x128xf32, #tpu.memory_space<vmem>>, vector<8x128xf32>
    %c0_119 = arith.constant 0 : index
    %c0_120 = arith.constant 0 : index
    %164 = vector.load %arg6[%c0_119, %c0_120] : memref<128x128xf32, #tpu.memory_space<vmem>>, vector<128x128xf32>
    %cst_121 = arith.constant dense<0.000000e+00> : vector<8x128xf32>
    %165 = tpu.matmul %159, %164, %cst_121 {dimension_numbers = #tpu.dot_dimension_numbers<[1], [0], [0], [1], [0, 0, 1, 1], [], []>} : vector<8x128xf32>, vector<128x128xf32>, vector<8x128xf32> -> vector<8x128xf32>
    %166 = arith.addf %163, %165 : vector<8x128xf32>
    %167 = math.tanh %166 : vector<8x128xf32>
    %c8_i32_122 = arith.constant 8 : i32
    %c1_123 = arith.constant 1 : index
    %c0_124 = arith.constant 0 : index
    %c0_125 = arith.constant 0 : index
    %168 = vector.load %arg12[%c1_123, %c0_124, %c0_125] : memref<2x8x128xf32, #tpu.memory_space<vmem>>, vector<1x8x128xf32>
    %169 = vector.shape_cast %168 : vector<1x8x128xf32> to vector<8x128xf32>
    %170 = vector.shape_cast %167 : vector<8x128xf32> to vector<1x8x128xf32>
    tpu.vector_store %arg12[%c1_123, %c0_124, %c0_125], %170 {strides = array<i32>} : memref<2x8x128xf32, #tpu.memory_space<vmem>>, vector<1x8x128xf32>,
    %c0_i32_126 = arith.constant 0 : i32
    %171 = arith.cmpi eq, %arg0, %c0_i32_126 : i32
    %172 = arith.extui %171 : i1 to i32
    %c0_i32_127 = arith.constant 0 : i32
    %173 = arith.cmpi ne, %172, %c0_i32_127 : i32
    scf.if %173 {
      %c0_128 = arith.constant 0 : index
      %c0_129 = arith.constant 0 : index
      %c0_130 = arith.constant 0 : index
      %174 = vector.load %arg12[%c0_128, %c0_129, %c0_130] : memref<2x8x128xf32, #tpu.memory_space<vmem>>, vector<2x8x128xf32>
      %c0_131 = arith.constant 0 : index
      %c0_132 = arith.constant 0 : index
      %c0_133 = arith.constant 0 : index
      %175 = vector.load %arg11[%c0_131, %c0_132, %c0_133] : memref<2x8x128xf32, #tpu.memory_space<vmem>>, vector<2x8x128xf32>
      tpu.vector_store %arg11[%c0_131, %c0_132, %c0_133], %174 {strides = array<i32>} : memref<2x8x128xf32, #tpu.memory_space<vmem>>, vector<2x8x128xf32>,
      %c1_134 = arith.constant 1 : index
      %c0_135 = arith.constant 0 : index
      %c0_136 = arith.constant 0 : index
      %176 = vector.load %arg12[%c1_134, %c0_135, %c0_136] : memref<2x8x128xf32, #tpu.memory_space<vmem>>, vector<1x8x128xf32>
      %177 = vector.shape_cast %176 : vector<1x8x128xf32> to vector<8x128xf32>
      %c0_137 = arith.constant 0 : index
      %c0_138 = arith.constant 0 : index
      %178 = vector.load %arg8[%c0_137, %c0_138] : memref<128x128xf32, #tpu.memory_space<vmem>>, vector<128x128xf32>
      %cst_139 = arith.constant dense<0.000000e+00> : vector<8x128xf32>
      %179 = tpu.matmul %177, %178, %cst_139 {dimension_numbers = #tpu.dot_dimension_numbers<[1], [0], [0], [1], [0, 0, 1, 1], [], []>} : vector<8x128xf32>, vector<128x128xf32>, vector<8x128xf32> -> vector<8x128xf32>
      %c0_140 = arith.constant 0 : index
      %c0_141 = arith.constant 0 : index
      %180 = vector.load %arg9[%c0_140, %c0_141] : memref<1x128xf32, #tpu.memory_space<vmem>>, vector<1x128xf32>
      %181 = vector.broadcast %180 : vector<1x128xf32> to vector<8x128xf32>
      %182 = arith.addf %179, %181 : vector<8x128xf32>
      %c0_142 = arith.constant 0 : index
      %c0_143 = arith.constant 0 : index
      %183 = vector.load %arg10[%c0_142, %c0_143] : memref<8x128xf32, #tpu.memory_space<vmem>>, vector<8x128xf32>
      tpu.vector_store %arg10[%c0_142, %c0_143], %182 {strides = array<i32>} : memref<8x128xf32, #tpu.memory_space<vmem>>, vector<8x128xf32>,
    } else {
    }
    return
  }
  func.func @transform_0(%arg0: i32) -> (i32, i32) {
    %c0_i32 = arith.constant 0 : i32
    %c0_i32_0 = arith.constant 0 : i32
    return %arg0, %c0_i32 : i32, i32
  }
  func.func @transform_1(%arg0: i32) -> (i32, i32) {
    %c0_i32 = arith.constant 0 : i32
    %c0_i32_0 = arith.constant 0 : i32
    %c0_i32_1 = arith.constant 0 : i32
    return %c0_i32, %c0_i32_0 : i32, i32
  }
  func.func @transform_2(%arg0: i32) -> (i32, i32) {
    %c0_i32 = arith.constant 0 : i32
    %c0_i32_0 = arith.constant 0 : i32
    %c0_i32_1 = arith.constant 0 : i32
    return %c0_i32, %c0_i32_0 : i32, i32
  }
  func.func @transform_3(%arg0: i32) -> (i32, i32) {
    %c0_i32 = arith.constant 0 : i32
    %c0_i32_0 = arith.constant 0 : i32
    %c0_i32_1 = arith.constant 0 : i32
    return %c0_i32, %c0_i32_0 : i32, i32
  }
  func.func @transform_4(%arg0: i32) -> (i32, i32) {
    %c0_i32 = arith.constant 0 : i32
    %c0_i32_0 = arith.constant 0 : i32
    %c0_i32_1 = arith.constant 0 : i32
    return %c0_i32, %c0_i32_0 : i32, i32
  }
  func.func @transform_5(%arg0: i32) -> (i32, i32) {
    %c0_i32 = arith.constant 0 : i32
    %c0_i32_0 = arith.constant 0 : i32
    %c0_i32_1 = arith.constant 0 : i32
    return %c0_i32, %c0_i32_0 : i32, i32
  }
  func.func @transform_6(%arg0: i32) -> (i32, i32) {
    %c0_i32 = arith.constant 0 : i32
    %c0_i32_0 = arith.constant 0 : i32
    %c0_i32_1 = arith.constant 0 : i32
    return %c0_i32, %c0_i32_0 : i32, i32
  }
  func.func @transform_7(%arg0: i32) -> (i32, i32) {
    %c0_i32 = arith.constant 0 : i32
    %c0_i32_0 = arith.constant 0 : i32
    %c0_i32_1 = arith.constant 0 : i32
    return %c0_i32, %c0_i32_0 : i32, i32
  }
  func.func @transform_8(%arg0: i32) -> (i32, i32) {
    %c0_i32 = arith.constant 0 : i32
    %c0_i32_0 = arith.constant 0 : i32
    %c0_i32_1 = arith.constant 0 : i32
    return %c0_i32, %c0_i32_0 : i32, i32
  }
  func.func @transform_9(%arg0: i32) -> (i32, i32) {
    %c0_i32 = arith.constant 0 : i32
    %c0_i32_0 = arith.constant 0 : i32
    %c0_i32_1 = arith.constant 0 : i32
    return %c0_i32, %c0_i32_0 : i32, i32
  }
  func.func @transform_10(%arg0: i32) -> (i32, i32, i32) {
    %c0_i32 = arith.constant 0 : i32
    %c0_i32_0 = arith.constant 0 : i32
    %c0_i32_1 = arith.constant 0 : i32
    %c0_i32_2 = arith.constant 0 : i32
    return %c0_i32, %c0_i32_0, %c0_i32_1 : i32, i32, i32
  }
}

</mosaic_0001>

<bundles_post_ra>
// kernel: tpu_custom_call.1
= control target key start
LH: loop header
LB: loop body
LE: loop exit
PB: predicated region body
PF: predicated region fallthrough
CT: control target
= control target key end

     0   :  { %16 = vsyncpa [#allocation6], 0  ;;  %s1636_s0 = inlined_call_operand.hbm [shape: f32[64,128], index: 0, kind: input, shape index: {}]   ;;  %s1637_s1 = inlined_call_operand.hbm [shape: f32[128,128], index: 1, kind: input, shape index: {}]   ;;  %s1638_s2 = inlined_call_operand.hbm [shape: f32[128,128], index: 2, kind: input, shape index: {}]   ;;  %s1639_s3 = inlined_call_operand.vmem [shape: f32[1,128], index: 3, kind: input, shape index: {}]   ;;  %s1640_s4 = inlined_call_operand.hbm [shape: f32[128,128], index: 4, kind: input, shape index: {}]   ;;  %s1641_s5 = inlined_call_operand.hbm [shape: f32[128,128], index: 5, kind: input, shape index: {}]   ;;  %s1642_s6 = inlined_call_operand.vmem [shape: f32[1,128], index: 6, kind: input, shape index: {}]   ;;  %s1643_s7 = inlined_call_operand.hbm [shape: f32[128,128], index: 7, kind: input, shape index: {}]   ;;  %s1644_s8 = inlined_call_operand.vmem [shape: f32[1,128], index: 8, kind: input, shape index: {}]   ;;  %s1645_s9 = inlined_call_operand.hbm [shape: f32[8,128], index: 9, kind: output, shape index: {0}]   ;;  %s1646_s10 = inlined_call_operand.hbm [shape: f32[2,8,128], index: 10, kind: output, shape index: {1}]  }
   0x1   :  { %17 = vsyncpa [#allocation9], 0 }
   0x2   :  { %18 = vsyncpa [#allocation12], 0 }
   0x3   :  { %19 = vsyncpa [#allocation15], 0 }
   0x4   :  { %20 = vsyncpa [#allocation7], 0 }
   0x5   :  { %21 = vsyncpa [#allocation18], 0  ;;  %s39_s15 = sshll.u32 %s1637_s1, 4  ;;  %s1166_s16 = smov [#allocation8]   ;;  %s40_s15 = int_to_ptr.hbm [resolvable:$true] %s39_s15 }
   0x6   :  { %s41_s17 = sshll.u32 %s1166_s16, 4  ;;  %s67_s20 = sshll.u32 %s1640_s4, 4  ;;  %s42_s17 = int_to_ptr.vmem [resolvable:$true] %s41_s17  ;;  %s68_s20 = int_to_ptr.hbm [resolvable:$true] %s67_s20 }
   0x7   :  { %s1167_s21 = smov 128   ;;  %s1168_s22 = smov 8  }
   0x8   :  { %47 = dma.hbm_to_vmem [thread:$0]  %s40_s15, 2048, %s42_s17, [#allocation9], %s1167_s21, %s1167_s21, %s1168_s22  }
   0x9   :  { %s1169_s23 = smov [#allocation11]   ;;  %s26_s1 = sshll.u32 %s1636_s0, 4  ;;  %s27_s1 = int_to_ptr.hbm [resolvable:$true] %s26_s1 }
   0xa   :  { %s69_s24 = sshll.u32 %s1169_s23, 4  ;;  %s52_s28 = sshll.u32 %s1638_s2, 4  ;;  %s70_s24 = int_to_ptr.vmem [resolvable:$true] %s69_s24  ;;  %s53_s28 = int_to_ptr.hbm [resolvable:$true] %s52_s28 }
   0xb   :  { %75 = dma.hbm_to_vmem [thread:$0]  %s68_s20, 2048, %s70_s24, [#allocation12], %s1167_s21, %s1167_s21, %s1168_s22  }
   0xc   :  { %s1170_s29 = smov [#allocation5]   ;;  %s1171_s11 = smov [#allocation10]  }
   0xd   :  { %s28_s30 = sshll.u32 %s1170_s29, 4  ;;  %s54_s0 = sshll.u32 %s1171_s11, 4  ;;  %s29_s30 = int_to_ptr.vmem [resolvable:$true] %s28_s30  ;;  %s55_s0 = int_to_ptr.vmem [resolvable:$true] %s54_s0 }
   0xe   :  { %34 = dma.hbm_to_vmem [thread:$0]  %s27_s1, 1024, %s29_s30, [#allocation6], %s1167_s21, %s1167_s21, %s1168_s22  }
   0xf   :  { %s80_s14 = sshll.u32 %s1641_s5, 4  ;;  %s95_s16 = sshll.u32 %s1643_s7, 4  ;;  %s81_s14 = int_to_ptr.hbm [resolvable:$true] %s80_s14  ;;  %s96_s16 = int_to_ptr.hbm [resolvable:$true] %s95_s16 }
  0x10   :  { %60 = dma.hbm_to_vmem [thread:$0]  %s53_s28, 2048, %s55_s0, [#allocation9], %s1167_s21, %s1167_s21, %s1168_s22  }
  0x11   :  { %s1172_s17 = smov [#allocation13]   ;;  %s1173_s19 = smov [#allocation14]  }
  0x12   :  { %s82_s18 = sshll.u32 %s1172_s17, 4  ;;  %s97_s5 = sshll.u32 %s1173_s19, 4  ;;  %s83_s18 = int_to_ptr.vmem [resolvable:$true] %s82_s18  ;;  %s98_s5 = int_to_ptr.vmem [resolvable:$true] %s97_s5 }
  0x13   :  { %88 = dma.hbm_to_vmem [thread:$0]  %s81_s14, 2048, %s83_s18, [#allocation12], %s1167_s21, %s1167_s21, %s1168_s22  }
  0x14   :  { %103 = dma.hbm_to_vmem [thread:$0]  %s96_s16, 2048, %s98_s5, [#allocation15], %s1167_s21, %s1167_s21, %s1168_s22  }
  0x15   :  { %1154 = dma.done.wait [#allocation6], 1024  }
  0x16   :  { %1155 = vsyncadd [#allocation6], 4294966272 }
  0x17   :  { %1156 = dma.done.wait [#allocation9], 4096  }
  0x18   :  { %1157 = vsyncadd [#allocation9], 4294963200 }
  0x19   :  { %1158 = dma.done.wait [#allocation12], 4096  }
  0x1a   :  { %1159 = vsyncadd [#allocation12], 4294963200 }
  0x1b   :  { %1160 = dma.done.wait [#allocation15], 2048  }
  0x1c   :  { %1161 = vsyncadd [#allocation15], 4294965248  ;;  %v159_v0 = vld [vmem:[#allocation8 + $0x78] sm:$0xff]  ;;  %v158_v1 = vld [vmem:[#allocation8 + $0x70] sm:$0xff]  ;;  %v1174_v33 = vmov 0.0   ;;  %s895_s1 = sshll.u32 %s1646_s10, 4  ;;  %s896_s1 = int_to_ptr.hbm [resolvable:$true] %s895_s1 }
  0x1d   :  { %v1268_v2 = vld [vmem:[#allocation10 + $0x78] sm:$0xff]  ;;  %164 = vmatpush.msra.mxu0 %v159_v0  ;;  %v1271_v3 = vld [vmem:[#allocation10 + $0x70] sm:$0xff]  ;;  %v157_v4 = vld [vmem:[#allocation8 + $0x68] sm:$0xff]  ;;  %s1176_s28 = smov [#allocation16]   ;;  %s885_s0 = sshll.u32 %s1645_s9, 4  ;;  %s886_s0 = int_to_ptr.hbm [resolvable:$true] %s885_s0 }
  0x1e   :  { %231 = vmatpush.msra.mxu1 %v1268_v2  ;;  %v1273_v5 = vld [vmem:[#allocation10 + $0x68] sm:$0xff]  ;;  %272 = vmatpush.msra.mxu2 %v1268_v2  ;;  %v156_v6 = vld [vmem:[#allocation8 + $0x60] sm:$0xff]  ;;  %v155_v8 = vld [vmem:[#allocation8 + $0x58] sm:$0xff]  ;;  %s883_s29 = sshll.u32 %s1176_s28, 4  ;;  %s884_s29 = int_to_ptr.vmem [resolvable:$true] %s883_s29 }
  0x1f   :  { %314 = vmatpush.msra.mxu3 %v1268_v2  ;;  %165 = vmatpush.msra.mxu0 %v158_v1  ;;  %v1278_v7 = vld [vmem:[#allocation10 + $0x60] sm:$0xff]  ;;  %v1283_v9 = vld [vmem:[#allocation10 + $0x58] sm:$0xff]  ;;  %v154_v10 = vld [vmem:[#allocation8 + $0x50] sm:$0xff] }
  0x20   :  { %232 = vmatpush.msra.mxu1 %v1271_v3  ;;  %273 = vmatpush.msra.mxu2 %v1271_v3  ;;  %v1288_v11 = vld [vmem:[#allocation10 + $0x50] sm:$0xff]  ;;  %v153_v12 = vld [vmem:[#allocation8 + $0x48] sm:$0xff]  ;;  %v152_v14 = vld [vmem:[#allocation8 + $0x40] sm:$0xff] }
  0x21   :  { %315 = vmatpush.msra.mxu3 %v1271_v3  ;;  %166 = vmatpush.msra.mxu0 %v157_v4  ;;  %v1293_v13 = vld [vmem:[#allocation10 + $0x48] sm:$0xff]  ;;  %v1298_v15 = vld [vmem:[#allocation10 + $0x40] sm:$0xff]  ;;  %v151_v16 = vld [vmem:[#allocation8 + $0x38] sm:$0xff] }
  0x22   :  { %233 = vmatpush.msra.mxu1 %v1273_v5  ;;  %274 = vmatpush.msra.mxu2 %v1273_v5  ;;  %v1303_v17 = vld [vmem:[#allocation10 + $0x38] sm:$0xff]  ;;  %v150_v18 = vld [vmem:[#allocation8 + $0x30] sm:$0xff]  ;;  %v149_v20 = vld [vmem:[#allocation8 + $0x28] sm:$0xff] }
  0x23   :  { %316 = vmatpush.msra.mxu3 %v1273_v5  ;;  %167 = vmatpush.msra.mxu0 %v156_v6  ;;  %v1308_v19 = vld [vmem:[#allocation10 + $0x30] sm:$0xff]  ;;  %v1313_v21 = vld [vmem:[#allocation10 + $0x28] sm:$0xff]  ;;  %v148_v22 = vld [vmem:[#allocation8 + $0x20] sm:$0xff] }
  0x24   :  { %234 = vmatpush.msra.mxu1 %v1278_v7  ;;  %275 = vmatpush.msra.mxu2 %v1278_v7  ;;  %v1318_v23 = vld [vmem:[#allocation10 + $0x20] sm:$0xff]  ;;  %v147_v24 = vld [vmem:[#allocation8 + $0x18] sm:$0xff]  ;;  %v146_v26 = vld [vmem:[#allocation8 + $0x10] sm:$0xff] }
  0x25   :  { %317 = vmatpush.msra.mxu3 %v1278_v7  ;;  %168 = vmatpush.msra.mxu0 %v155_v8  ;;  %v1323_v25 = vld [vmem:[#allocation10 + $0x18] sm:$0xff]  ;;  %v1328_v27 = vld [vmem:[#allocation10 + $0x10] sm:$0xff]  ;;  %v145_v28 = vld [vmem:[#allocation8 + $0x8] sm:$0xff] }
  0x26   :  { %235 = vmatpush.msra.mxu1 %v1283_v9  ;;  %276 = vmatpush.msra.mxu2 %v1283_v9  ;;  %v1333_v29 = vld [vmem:[#allocation10 + $0x8] sm:$0xff]  ;;  %v144_v30 = vld [vmem:[#allocation8] sm:$0xff]  ;;  %v138_v41 = vld [vmem:[#allocation5 + $0x10] sm:$0xff] }
  0x27   :  { %318 = vmatpush.msra.mxu3 %v1283_v9  ;;  %169 = vmatpush.msra.mxu0 %v154_v10  ;;  %v1338_v31 = vld [vmem:[#allocation10] sm:$0xff]  ;;  %v137_v34 = vld [vmem:[#allocation5 + $0x8] sm:$0xff]  ;;  %v139_v47 = vld [vmem:[#allocation5 + $0x18] sm:$0xff] }
  0x28   :  { %236 = vmatpush.msra.mxu1 %v1288_v11  ;;  %277 = vmatpush.msra.mxu2 %v1288_v11  ;;  %v136_v32 = vld [vmem:[#allocation5] sm:$0xff]  ;;  %v572_v48 = vld [vmem:[#allocation11 + $0x78] sm:$0xff]  ;;  %v571_v49 = vld [vmem:[#allocation11 + $0x70] sm:$0xff] }
  0x29   :  { %319 = vmatpush.msra.mxu3 %v1288_v11  ;;  %170 = vmatpush.msra.mxu0 %v153_v12  ;;  %v1432_v35 = vld [vmem:[%s1639_s3] ss:$0 sm:$0xff]  ;;  %v570_v50 = vld [vmem:[#allocation11 + $0x68] sm:$0xff]  ;;  %v568_v52 = vld [vmem:[#allocation11 + $0x58] sm:$0xff] }
  0x2a   :  { %237 = vmatpush.msra.mxu1 %v1293_v13  ;;  %278 = vmatpush.msra.mxu2 %v1293_v13  ;;  %v569_v51 = vld [vmem:[#allocation11 + $0x60] sm:$0xff]  ;;  %v567_v53 = vld [vmem:[#allocation11 + $0x50] sm:$0xff]  ;;  %v566_v59 = vld [vmem:[#allocation11 + $0x48] sm:$0xff] }
  0x2b   :  { %320 = vmatpush.msra.mxu3 %v1293_v13  ;;  %171 = vmatpush.msra.mxu0 %v152_v14  ;;  %v565_v60 = vld [vmem:[#allocation11 + $0x40] sm:$0xff]  ;;  %v564_v61 = vld [vmem:[#allocation11 + $0x38] sm:$0xff]  ;;  %v563_v62 = vld [vmem:[#allocation11 + $0x30] sm:$0xff] }
  0x2c   :  { %238 = vmatpush.msra.mxu1 %v1298_v15  ;;  %279 = vmatpush.msra.mxu2 %v1298_v15  ;;  %v562_v63 = vld [vmem:[#allocation11 + $0x28] sm:$0xff]  ;;  %v561_v0 = vld [vmem:[#allocation11 + $0x20] sm:$0xff]  ;;  %v560_v1 = vld [vmem:[#allocation11 + $0x18] sm:$0xff] }
  0x2d   :  { %321 = vmatpush.msra.mxu3 %v1298_v15  ;;  %172 = vmatpush.msra.mxu0 %v151_v16  ;;  %v558_v4 = vld [vmem:[#allocation11 + $0x8] sm:$0xff]  ;;  %v1446_v12 = vld [vmem:[#allocation13 + $0x70] sm:$0xff]  ;;  %v1456_v14 = vld [vmem:[#allocation13 + $0x60] sm:$0xff] }
  0x2e   :  { %239 = vmatpush.msra.mxu1 %v1303_v17  ;;  %280 = vmatpush.msra.mxu2 %v1303_v17  ;;  %v1469_v16 = vld [vmem:[#allocation13 + $0x50] sm:$0xff] }
  0x2f   :  { %322 = vmatpush.msra.mxu3 %v1303_v17  ;;  %173 = vmatpush.msra.mxu0 %v150_v18  ;;  %v1488_v18 = vld [vmem:[#allocation13 + $0x40] sm:$0xff] }
  0x30   :  { %240 = vmatpush.msra.mxu1 %v1308_v19  ;;  %281 = vmatpush.msra.mxu2 %v1308_v19 }
  0x31   :  { %323 = vmatpush.msra.mxu3 %v1308_v19  ;;  %174 = vmatpush.msra.mxu0 %v149_v20  ;;  %v1497_v20 = vld [vmem:[#allocation13 + $0x30] sm:$0xff] }
  0x32   :  { %241 = vmatpush.msra.mxu1 %v1313_v21  ;;  %282 = vmatpush.msra.mxu2 %v1313_v21 }
  0x33   :  { %324 = vmatpush.msra.mxu3 %v1313_v21  ;;  %175 = vmatpush.msra.mxu0 %v148_v22  ;;  %v1510_v22 = vld [vmem:[#allocation13 + $0x20] sm:$0xff] }
  0x34   :  { %242 = vmatpush.msra.mxu1 %v1318_v23  ;;  %283 = vmatpush.msra.mxu2 %v1318_v23 }
  0x35   :  { %325 = vmatpush.msra.mxu3 %v1318_v23  ;;  %176 = vmatpush.msra.mxu0 %v147_v24  ;;  %v1518_v24 = vld [vmem:[#allocation13 + $0x10] sm:$0xff] }
  0x36   :  { %243 = vmatpush.msra.mxu1 %v1323_v25  ;;  %284 = vmatpush.msra.mxu2 %v1323_v25 }
  0x37   :  { %326 = vmatpush.msra.mxu3 %v1323_v25  ;;  %177 = vmatpush.msra.mxu0 %v146_v26  ;;  %v1523_v26 = vld [vmem:[#allocation13 + $0x8] sm:$0xff] }
  0x38   :  { %244 = vmatpush.msra.mxu1 %v1328_v27  ;;  %285 = vmatpush.msra.mxu2 %v1328_v27 }
  0x39   :  { %327 = vmatpush.msra.mxu3 %v1328_v27  ;;  %178 = vmatpush.msra.mxu0 %v145_v28 }
  0x3a   :  { %245 = vmatpush.msra.mxu1 %v1333_v29  ;;  %286 = vmatpush.msra.mxu2 %v1333_v29 }
  0x3b   :  { %328 = vmatpush.msra.mxu3 %v1333_v29  ;;  %179 = vmatpush.msra.mxu0 %v144_v30 }
  0x3c   :  { %246 = vmatpush.msra.mxu1 %v1338_v31  ;;  %180 = vmatmul.f32.vlgmr.msra.gmra.mxu0 %v136_v32  ;;  %v142_v32 = vld [vmem:[#allocation5 + $0x30] sm:$0xff] }
  0x3d   :  { %247 = vmatmul.f32.vlgmr.msra.gmra.mxu1 %v1174_v33  ;;  %287 = vmatpush.msra.mxu2 %v1338_v31 }
  0x3e   :  { %329 = vmatpush.msra.mxu3 %v1338_v31  ;;  %356 = vmatpush.msrb.mxu1 %v1268_v2 }
  0x3f   :  { %398 = vmatpush.msrb.mxu2 %v1268_v2  ;;  %482 = vmatpush.msrb.mxu0 %v1268_v2 }
  0x40   :  { %440 = vmatpush.msrb.mxu3 %v1268_v2  ;;  %357 = vmatpush.msrb.mxu1 %v1271_v3 }
  0x41   :  { %399 = vmatpush.msrb.mxu2 %v1271_v3  ;;  %483 = vmatpush.msrb.mxu0 %v1271_v3 }
  0x42   :  { %441 = vmatpush.msrb.mxu3 %v1271_v3  ;;  %358 = vmatpush.msrb.mxu1 %v1273_v5 }
  0x43   :  { %400 = vmatpush.msrb.mxu2 %v1273_v5  ;;  %484 = vmatpush.msrb.mxu0 %v1273_v5 }
  0x44   :  { %442 = vmatpush.msrb.mxu3 %v1273_v5  ;;  %359 = vmatpush.msrb.mxu1 %v1278_v7 }
  0x45   :  { %401 = vmatpush.msrb.mxu2 %v1278_v7  ;;  %485 = vmatpush.msrb.mxu0 %v1278_v7 }
  0x46   :  { %443 = vmatpush.msrb.mxu3 %v1278_v7  ;;  %360 = vmatpush.msrb.mxu1 %v1283_v9 }
  0x47   :  { %402 = vmatpush.msrb.mxu2 %v1283_v9  ;;  %486 = vmatpush.msrb.mxu0 %v1283_v9 }
  0x48   :  { %444 = vmatpush.msrb.mxu3 %v1283_v9  ;;  %361 = vmatpush.msrb.mxu1 %v1288_v11 }
  0x49   :  { %403 = vmatpush.msrb.mxu2 %v1288_v11  ;;  %487 = vmatpush.msrb.mxu0 %v1288_v11 }
  0x4a   :  { %445 = vmatpush.msrb.mxu3 %v1288_v11  ;;  %362 = vmatpush.msrb.mxu1 %v1293_v13 }
  0x4b   :  { %404 = vmatpush.msrb.mxu2 %v1293_v13  ;;  %488 = vmatpush.msrb.mxu0 %v1293_v13 }
  0x4c   :  { %446 = vmatpush.msrb.mxu3 %v1293_v13  ;;  %363 = vmatpush.msrb.mxu1 %v1298_v15 }
  0x4d   :  { %405 = vmatpush.msrb.mxu2 %v1298_v15  ;;  %489 = vmatpush.msrb.mxu0 %v1298_v15 }
  0x4e   :  { %447 = vmatpush.msrb.mxu3 %v1298_v15  ;;  %364 = vmatpush.msrb.mxu1 %v1303_v17 }
  0x4f   :  { %406 = vmatpush.msrb.mxu2 %v1303_v17  ;;  %490 = vmatpush.msrb.mxu0 %v1303_v17 }
  0x50   :  { %448 = vmatpush.msrb.mxu3 %v1303_v17  ;;  %365 = vmatpush.msrb.mxu1 %v1308_v19 }
  0x51   :  { %407 = vmatpush.msrb.mxu2 %v1308_v19  ;;  %491 = vmatpush.msrb.mxu0 %v1308_v19 }
  0x52   :  { %449 = vmatpush.msrb.mxu3 %v1308_v19  ;;  %366 = vmatpush.msrb.mxu1 %v1313_v21 }
  0x53   :  { %408 = vmatpush.msrb.mxu2 %v1313_v21  ;;  %492 = vmatpush.msrb.mxu0 %v1313_v21 }
  0x54   :  { %450 = vmatpush.msrb.mxu3 %v1313_v21  ;;  %367 = vmatpush.msrb.mxu1 %v1318_v23 }
  0x55   :  { %409 = vmatpush.msrb.mxu2 %v1318_v23  ;;  %493 = vmatpush.msrb.mxu0 %v1318_v23 }
  0x56   :  { %451 = vmatpush.msrb.mxu3 %v1318_v23  ;;  %368 = vmatpush.msrb.mxu1 %v1323_v25 }
  0x57   :  { %410 = vmatpush.msrb.mxu2 %v1323_v25  ;;  %494 = vmatpush.msrb.mxu0 %v1323_v25 }
  0x58   :  { %452 = vmatpush.msrb.mxu3 %v1323_v25  ;;  %369 = vmatpush.msrb.mxu1 %v1328_v27 }
  0x59   :  { %411 = vmatpush.msrb.mxu2 %v1328_v27  ;;  %495 = vmatpush.msrb.mxu0 %v1328_v27 }
  0x5a   :  { %453 = vmatpush.msrb.mxu3 %v1328_v27  ;;  %370 = vmatpush.msrb.mxu1 %v1333_v29 }
  0x5b   :  { %412 = vmatpush.msrb.mxu2 %v1333_v29  ;;  %496 = vmatpush.msrb.mxu0 %v1333_v29 }
  0x5c   :  { %454 = vmatpush.msrb.mxu3 %v1333_v29  ;;  %371 = vmatpush.msrb.mxu1 %v1338_v31 }
  0x5d   :  { %413 = vmatpush.msrb.mxu2 %v1338_v31  ;;  %497 = vmatpush.msrb.mxu0 %v1338_v31 }
  0x5e   :  { %455 = vmatpush.msrb.mxu3 %v1338_v31  ;;  %524 = vmatpush.msra.mxu1 %v1268_v2  ;;  %v559_v2 = vld [vmem:[#allocation11 + $0x10] sm:$0xff] }
  0x5f   :  { %183 = vmatmul.f32.gmra.mxu0 %v137_v34 }
  0x60   :  { %525 = vmatpush.msra.mxu1 %v1271_v3  ;;  %v140_v3 = vld [vmem:[#allocation5 + $0x20] sm:$0xff] }
  0x62   :  { %526 = vmatpush.msra.mxu1 %v1273_v5  ;;  %v557_v5 = vld [vmem:[#allocation11] sm:$0xff] }
  0x64   :  { %527 = vmatpush.msra.mxu1 %v1278_v7 }
  0x66   :  { %528 = vmatpush.msra.mxu1 %v1283_v9 }
  0x67   :  { %186 = vmatmul.f32.gmra.mxu0 %v138_v41 }
  0x68   :  { %529 = vmatpush.msra.mxu1 %v1288_v11  ;;  %v1444_v11 = vld [vmem:[#allocation13 + $0x78] sm:$0xff] }
  0x69   :  { %668 = vmatpush.msra.mxu0 %v1444_v11 }
  0x6a   :  { %530 = vmatpush.msra.mxu1 %v1293_v13  ;;  %v1450_v13 = vld [vmem:[#allocation13 + $0x68] sm:$0xff] }
  0x6b   :  { %669 = vmatpush.msra.mxu0 %v1446_v12 }
  0x6c   :  { %531 = vmatpush.msra.mxu1 %v1298_v15  ;;  %v1462_v15 = vld [vmem:[#allocation13 + $0x58] sm:$0xff] }
  0x6d   :  { %670 = vmatpush.msra.mxu0 %v1450_v13 }
  0x6e   :  { %532 = vmatpush.msra.mxu1 %v1303_v17  ;;  %v1482_v17 = vld [vmem:[#allocation13 + $0x48] sm:$0xff] }
  0x6f   :  { %189 = vmatmul.f32.gmra.mxu0 %v139_v47 }
  0x70   :  { %533 = vmatpush.msra.mxu1 %v1308_v19  ;;  %671 = vmatpush.msra.mxu0 %v1456_v14  ;;  %v1492_v19 = vld [vmem:[#allocation13 + $0x38] sm:$0xff] }
  0x72   :  { %534 = vmatpush.msra.mxu1 %v1313_v21  ;;  %672 = vmatpush.msra.mxu0 %v1462_v15  ;;  %v1500_v21 = vld [vmem:[#allocation13 + $0x28] sm:$0xff] }
  0x74   :  { %535 = vmatpush.msra.mxu1 %v1318_v23  ;;  %673 = vmatpush.msra.mxu0 %v1469_v16  ;;  %v1516_v23 = vld [vmem:[#allocation13 + $0x18] sm:$0xff] }
  0x76   :  { %536 = vmatpush.msra.mxu1 %v1323_v25  ;;  %674 = vmatpush.msra.mxu0 %v1482_v17  ;;  %v141_v25 = vld [vmem:[#allocation5 + $0x28] sm:$0xff] }
  0x77   :  { %192 = vmatmul.f32.gmra.mxu0 %v140_v3 }
  0x78   :  { %537 = vmatpush.msra.mxu1 %v1328_v27  ;;  %675 = vmatpush.msra.mxu0 %v1488_v18  ;;  %v1533_v27 = vld [vmem:[#allocation13] sm:$0xff] }
  0x7a   :  { %538 = vmatpush.msra.mxu1 %v1333_v29  ;;  %676 = vmatpush.msra.mxu0 %v1492_v19 }
  0x7c   :  { %539 = vmatpush.msra.mxu1 %v1338_v31  ;;  %677 = vmatpush.msra.mxu0 %v1497_v20 }
  0x7e   :  { %678 = vmatpush.msra.mxu0 %v1500_v21 }
  0x7f   :  { %195 = vmatmul.f32.gmra.mxu0 %v141_v25  ;;  %v845_v25 = vld [vmem:[#allocation14 + $0x40] sm:$0xff] }
  0x80   :  { %679 = vmatpush.msra.mxu0 %v1510_v22 }
  0x82   :  { %680 = vmatpush.msra.mxu0 %v1516_v23 }
  0x84   :  { %681 = vmatpush.msra.mxu0 %v1518_v24 }
  0x86   :  { %682 = vmatpush.msra.mxu0 %v1523_v26 }
  0x87   :  { %198 = vmatmul.f32.gmra.mxu0 %v142_v32 }
  0x88   :  { %683 = vmatpush.msra.mxu0 %v1533_v27 }
  0xb9   :  { %v181_v36 = vpop.f32.mrf.mxu0 }
  0xba   :  { %v248_v37 = vpop.f32.mrf.mxu1  ;;  %v182_v38 = vadd.f32 %v1432_v35, %v181_v36 }
  0xbc   :  { %v251_v39 = vadd.f32 %v248_v37, %v182_v38 }
  0xbe   :  { %930 = vtanh.f32 %v251_v39 }
  0xc4   :  { %v1435_v40 = vpop.eup %930 }
  0xc5   :  { %288 = vmatmul.f32.vlgmr.msra.gmra.mxu2 %v1435_v40 }
  0xc6   :  { %577 = vmatpush.msra.mxu2 %v572_v48 }
  0xc8   :  { %578 = vmatpush.msra.mxu2 %v571_v49 }
  0xca   :  { %579 = vmatpush.msra.mxu2 %v570_v50 }
  0xcc   :  { %580 = vmatpush.msra.mxu2 %v569_v51 }
  0xce   :  { %581 = vmatpush.msra.mxu2 %v568_v52 }
  0xd0   :  { %582 = vmatpush.msra.mxu2 %v567_v53 }
  0xd2   :  { %583 = vmatpush.msra.mxu2 %v566_v59 }
  0xd4   :  { %584 = vmatpush.msra.mxu2 %v565_v60 }
  0xd6   :  { %585 = vmatpush.msra.mxu2 %v564_v61 }
  0xd8   :  { %586 = vmatpush.msra.mxu2 %v563_v62 }
  0xda   :  { %587 = vmatpush.msra.mxu2 %v562_v63 }
  0xdc   :  { %v184_v42 = vpop.f32.mrf.mxu0  ;;  %588 = vmatpush.msra.mxu2 %v561_v0 }
  0xdd   :  { %v185_v43 = vadd.f32 %v1432_v35, %v184_v42 }
  0xde   :  { %589 = vmatpush.msra.mxu2 %v560_v1 }
  0xe0   :  { %590 = vmatpush.msra.mxu2 %v559_v2 }
  0xe2   :  { %591 = vmatpush.msra.mxu2 %v558_v4 }
  0xe4   :  { %v187_v54 = vpop.f32.mrf.mxu0  ;;  %592 = vmatpush.msra.mxu2 %v557_v5 }
  0xe5   :  { %v188_v55 = vadd.f32 %v1432_v35, %v187_v54 }
  0xec   :  { %v190_v6 = vpop.f32.mrf.mxu0 }
  0xed   :  { %v191_v7 = vadd.f32 %v1432_v35, %v190_v6 }
  0xf4   :  { %v193_v28 = vpop.f32.mrf.mxu0 }
  0xf5   :  { %v194_v29 = vadd.f32 %v1432_v35, %v193_v28  ;;  %v843_v28 = vld [vmem:[#allocation14 + $0x30] sm:$0xff] }
  0xfc   :  { %v196_v36 = vpop.f32.mrf.mxu0 }
  0xfd   :  { %v197_v37 = vadd.f32 %v1432_v35, %v196_v36  ;;  %v840_v36 = vld [vmem:[#allocation14 + $0x18] sm:$0xff] }
 0x104   :  { %v199_v47 = vpop.f32.mrf.mxu0 }
 0x105   :  { %v200_v49 = vadd.f32 %v1432_v35, %v199_v47 }
 0x148   :  { %v289_v44 = vpop.f32.mrf.mxu2 }
 0x149   :  { %v292_v45 = vadd.f32 %v289_v44, %v185_v43 }
 0x14b   :  { %932 = vtanh.f32 %v292_v45 }
 0x151   :  { %v1439_v46 = vpop.eup %932 }
 0x152   :  { %330 = vmatmul.f32.vlgmr.msra.gmra.mxu3 %v1439_v46 }
 0x153   :  { %645 = vmatpush.msra.mxu3 %v1444_v11 }
 0x155   :  { %646 = vmatpush.msra.mxu3 %v1446_v12 }
 0x157   :  { %647 = vmatpush.msra.mxu3 %v1450_v13 }
 0x159   :  { %648 = vmatpush.msra.mxu3 %v1456_v14 }
 0x15b   :  { %649 = vmatpush.msra.mxu3 %v1462_v15 }
 0x15d   :  { %650 = vmatpush.msra.mxu3 %v1469_v16 }
 0x15f   :  { %651 = vmatpush.msra.mxu3 %v1482_v17 }
 0x161   :  { %652 = vmatpush.msra.mxu3 %v1488_v18 }
 0x163   :  { %653 = vmatpush.msra.mxu3 %v1492_v19 }
 0x165   :  { %654 = vmatpush.msra.mxu3 %v1497_v20 }
 0x167   :  { %655 = vmatpush.msra.mxu3 %v1500_v21 }
 0x169   :  { %656 = vmatpush.msra.mxu3 %v1510_v22 }
 0x16b   :  { %657 = vmatpush.msra.mxu3 %v1516_v23 }
 0x16d   :  { %658 = vmatpush.msra.mxu3 %v1518_v24 }
 0x16f   :  { %659 = vmatpush.msra.mxu3 %v1523_v26 }
 0x171   :  { %660 = vmatpush.msra.mxu3 %v1533_v27 }
 0x1d5   :  { %v331_v56 = vpop.f32.mrf.mxu3 }
 0x1d6   :  { %v334_v57 = vadd.f32 %v331_v56, %v188_v55 }
 0x1d8   :  { %934 = vtanh.f32 %v334_v57 }
 0x1de   :  { %v935_v58 = vpop.eup %934 }
 0x1df   :  { %372 = vmatmul.f32.vlgmr.msrb.gmra.mxu1 %v935_v58 }
 0x1e0   :  { %691 = vmatpush.msrb.mxu1 %v1444_v11 }
 0x1e2   :  { %692 = vmatpush.msrb.mxu1 %v1446_v12 }
 0x1e4   :  { %693 = vmatpush.msrb.mxu1 %v1450_v13 }
 0x1e6   :  { %694 = vmatpush.msrb.mxu1 %v1456_v14 }
 0x1e8   :  { %695 = vmatpush.msrb.mxu1 %v1462_v15 }
 0x1ea   :  { %696 = vmatpush.msrb.mxu1 %v1469_v16 }
 0x1ec   :  { %697 = vmatpush.msrb.mxu1 %v1482_v17 }
 0x1ee   :  { %698 = vmatpush.msrb.mxu1 %v1488_v18 }
 0x1f0   :  { %699 = vmatpush.msrb.mxu1 %v1492_v19 }
 0x1f2   :  { %700 = vmatpush.msrb.mxu1 %v1497_v20 }
 0x1f4   :  { %701 = vmatpush.msrb.mxu1 %v1500_v21 }
 0x1f6   :  { %702 = vmatpush.msrb.mxu1 %v1510_v22 }
 0x1f8   :  { %703 = vmatpush.msrb.mxu1 %v1516_v23 }
 0x1fa   :  { %704 = vmatpush.msrb.mxu1 %v1518_v24 }
 0x1fc   :  { %705 = vmatpush.msrb.mxu1 %v1523_v26 }
 0x1fe   :  { %706 = vmatpush.msrb.mxu1 %v1533_v27 }
 0x25c   :  { %v373_v8 = vpop.f32.mrf.mxu1 }
 0x25d   :  { %v376_v9 = vadd.f32 %v373_v8, %v191_v7 }
 0x25f   :  { %936 = vtanh.f32 %v376_v9 }
 0x265   :  { %v937_v10 = vpop.eup %936 }
 0x266   :  { %414 = vmatmul.f32.vlgmr.msrb.gmra.mxu2 %v937_v10 }
 0x267   :  { %783 = vmatpush.msrb.mxu2 %v1444_v11 }
 0x269   :  { %784 = vmatpush.msrb.mxu2 %v1446_v12 }
 0x26b   :  { %785 = vmatpush.msrb.mxu2 %v1450_v13 }
 0x26d   :  { %786 = vmatpush.msrb.mxu2 %v1456_v14 }
 0x26e   :  { %593 = vmatmul.f32.vlgmr.msra.gmra.mxu2 %v1435_v40  ;;  %v1580_v40 = vld [vmem:[%s1642_s6] ss:$0 sm:$0xff]  ;;  %s1175_s6 = smov [#allocation17]  }
 0x26f   :  { %787 = vmatpush.msrb.mxu2 %v1462_v15  ;;  %s893_s24 = sshll.u32 %s1175_s6, 4  ;;  %s894_s24 = int_to_ptr.vmem [resolvable:$true] %s893_s24 }
 0x271   :  { %788 = vmatpush.msrb.mxu2 %v1469_v16 }
 0x273   :  { %789 = vmatpush.msrb.mxu2 %v1482_v17 }
 0x275   :  { %790 = vmatpush.msrb.mxu2 %v1488_v18 }
 0x276   :  { %596 = vmatmul.f32.gmra.mxu2 %v1439_v46 }
 0x277   :  { %791 = vmatpush.msrb.mxu2 %v1492_v19 }
 0x279   :  { %792 = vmatpush.msrb.mxu2 %v1497_v20 }
 0x27b   :  { %793 = vmatpush.msrb.mxu2 %v1500_v21 }
 0x27d   :  { %794 = vmatpush.msrb.mxu2 %v1510_v22 }
 0x27e   :  { %599 = vmatmul.f32.gmra.mxu2 %v935_v58 }
 0x27f   :  { %795 = vmatpush.msrb.mxu2 %v1516_v23 }
 0x281   :  { %796 = vmatpush.msrb.mxu2 %v1518_v24 }
 0x283   :  { %797 = vmatpush.msrb.mxu2 %v1523_v26 }
 0x285   :  { %798 = vmatpush.msrb.mxu2 %v1533_v27 }
 0x286   :  { %602 = vmatmul.f32.gmra.mxu2 %v937_v10 }
 0x2e9   :  { %v415_v30 = vpop.f32.mrf.mxu2 }
 0x2ea   :  { %v418_v31 = vadd.f32 %v415_v30, %v194_v29  ;;  %v842_v29 = vld [vmem:[#allocation14 + $0x28] sm:$0xff] }
 0x2ec   :  { %938 = vtanh.f32 %v418_v31 }
 0x2f1   :  { %v594_v41 = vpop.f32.mrf.mxu2 }
 0x2f2   :  { %v939_v34 = vpop.eup %938  ;;  %v595_v42 = vadd.f32 %v1580_v40, %v594_v41 }
 0x2f3   :  { %456 = vmatmul.f32.vlgmr.msrb.gmra.mxu3 %v939_v34  ;;  %605 = vmatmul.f32.gmra.mxu2 %v939_v34 }
 0x2f4   :  { %714 = vmatpush.msrb.mxu3 %v1444_v11 }
 0x2f6   :  { %715 = vmatpush.msrb.mxu3 %v1446_v12 }
 0x2f8   :  { %716 = vmatpush.msrb.mxu3 %v1450_v13 }
 0x2f9   :  { %v597_v52 = vpop.f32.mrf.mxu2 }
 0x2fa   :  { %717 = vmatpush.msrb.mxu3 %v1456_v14  ;;  %v598_v53 = vadd.f32 %v1580_v40, %v597_v52 }
 0x2fb   :  { %661 = vmatmul.f32.vlgmr.msra.gmra.mxu3 %v1174_v33  ;;  %v143_v33 = vld [vmem:[#allocation5 + $0x38] sm:$0xff] }
 0x2fc   :  { %718 = vmatpush.msrb.mxu3 %v1462_v15  ;;  %201 = vmatmul.f32.gmra.mxu0 %v143_v33  ;;  %v841_v33 = vld [vmem:[#allocation14 + $0x20] sm:$0xff] }
 0x2fe   :  { %719 = vmatpush.msrb.mxu3 %v1469_v16 }
 0x300   :  { %720 = vmatpush.msrb.mxu3 %v1482_v17 }
 0x301   :  { %v600_v61 = vpop.f32.mrf.mxu2 }
 0x302   :  { %721 = vmatpush.msrb.mxu3 %v1488_v18  ;;  %v601_v62 = vadd.f32 %v1580_v40, %v600_v61 }
 0x304   :  { %722 = vmatpush.msrb.mxu3 %v1492_v19 }
 0x306   :  { %723 = vmatpush.msrb.mxu3 %v1497_v20 }
 0x308   :  { %724 = vmatpush.msrb.mxu3 %v1500_v21 }
 0x309   :  { %v603_v3 = vpop.f32.mrf.mxu2 }
 0x30a   :  { %725 = vmatpush.msrb.mxu3 %v1510_v22  ;;  %v604_v4 = vadd.f32 %v1580_v40, %v603_v3 }
 0x30c   :  { %726 = vmatpush.msrb.mxu3 %v1516_v23 }
 0x30e   :  { %727 = vmatpush.msrb.mxu3 %v1518_v24 }
 0x310   :  { %728 = vmatpush.msrb.mxu3 %v1523_v26 }
 0x312   :  { %729 = vmatpush.msrb.mxu3 %v1533_v27 }
 0x314   :  { %806 = vmatpush.msra.mxu3 %v1444_v11 }
 0x316   :  { %807 = vmatpush.msra.mxu3 %v1446_v12 }
 0x318   :  { %808 = vmatpush.msra.mxu3 %v1450_v13 }
 0x31a   :  { %809 = vmatpush.msra.mxu3 %v1456_v14 }
 0x31c   :  { %810 = vmatpush.msra.mxu3 %v1462_v15 }
 0x31e   :  { %811 = vmatpush.msra.mxu3 %v1469_v16 }
 0x320   :  { %812 = vmatpush.msra.mxu3 %v1482_v17 }
 0x322   :  { %813 = vmatpush.msra.mxu3 %v1488_v18 }
 0x324   :  { %814 = vmatpush.msra.mxu3 %v1492_v19 }
 0x326   :  { %815 = vmatpush.msra.mxu3 %v1497_v20 }
 0x328   :  { %816 = vmatpush.msra.mxu3 %v1500_v21 }
 0x32a   :  { %817 = vmatpush.msra.mxu3 %v1510_v22 }
 0x32c   :  { %818 = vmatpush.msra.mxu3 %v1516_v23 }
 0x32e   :  { %819 = vmatpush.msra.mxu3 %v1518_v24 }
 0x330   :  { %820 = vmatpush.msra.mxu3 %v1523_v26 }
 0x332   :  { %821 = vmatpush.msra.mxu3 %v1533_v27 }
 0x376   :  { %v457_v38 = vpop.f32.mrf.mxu3  ;;  %v606_v7 = vpop.f32.mrf.mxu2 }
 0x377   :  { %v460_v39 = vadd.f32 %v457_v38, %v197_v37  ;;  %v607_v8 = vadd.f32 %v1580_v40, %v606_v7  ;;  %v839_v37 = vld [vmem:[#allocation14 + $0x10] sm:$0xff]  ;;  %v838_v38 = vld [vmem:[#allocation14 + $0x8] sm:$0xff] }
 0x379   :  { %940 = vtanh.f32 %v460_v39  ;;  %v202_v48 = vpop.f32.mrf.mxu0  ;;  %v837_v39 = vld [vmem:[#allocation14] sm:$0xff] }
 0x37a   :  { %v203_v58 = vadd.f32 %v1432_v35, %v202_v48 }
 0x37e   :  { %v662_v43 = vpop.f32.mrf.mxu3 }
 0x37f   :  { %v941_v44 = vpop.eup %940  ;;  %v665_v45 = vadd.f32 %v662_v43, %v595_v42 }
 0x380   :  { %498 = vmatmul.f32.vlgmr.msrb.gmra.mxu0 %v941_v44  ;;  %608 = vmatmul.f32.gmra.mxu2 %v941_v44 }
 0x381   :  { %942 = vtanh.f32 %v665_v45  ;;  %737 = vmatpush.msrb.mxu0 %v1444_v11 }
 0x383   :  { %738 = vmatpush.msrb.mxu0 %v1446_v12 }
 0x385   :  { %739 = vmatpush.msrb.mxu0 %v1450_v13 }
 0x387   :  { %v943_v46 = vpop.eup %942  ;;  %740 = vmatpush.msrb.mxu0 %v1456_v14 }
 0x388   :  { %684 = vmatmul.f32.vlgmr.msra.gmra.mxu0 %v943_v46 }
 0x389   :  { %741 = vmatpush.msrb.mxu0 %v1462_v15 }
 0x38b   :  { %742 = vmatpush.msrb.mxu0 %v1469_v16 }
 0x38d   :  { %743 = vmatpush.msrb.mxu0 %v1482_v17 }
 0x38f   :  { %744 = vmatpush.msrb.mxu0 %v1488_v18 }
 0x391   :  { %745 = vmatpush.msrb.mxu0 %v1492_v19 }
 0x393   :  { %746 = vmatpush.msrb.mxu0 %v1497_v20 }
 0x395   :  { %747 = vmatpush.msrb.mxu0 %v1500_v21 }
 0x397   :  { %748 = vmatpush.msrb.mxu0 %v1510_v22 }
 0x399   :  { %749 = vmatpush.msrb.mxu0 %v1516_v23 }
 0x39b   :  { %750 = vmatpush.msrb.mxu0 %v1518_v24 }
 0x39d   :  { %751 = vmatpush.msrb.mxu0 %v1523_v26 }
 0x39f   :  { %752 = vmatpush.msrb.mxu0 %v1533_v27 }
 0x3fd   :  { %v499_v50 = vpop.f32.mrf.mxu0 }
 0x3fe   :  { %v502_v51 = vadd.f32 %v499_v50, %v200_v49 }
 0x400   :  { %944 = vtanh.f32 %v502_v51 }
 0x405   :  { %v685_v54 = vpop.f32.mrf.mxu0 }
 0x406   :  { %v945_v55 = vpop.eup %944  ;;  %v688_v56 = vadd.f32 %v685_v54, %v598_v53 }
 0x407   :  { %540 = vmatmul.f32.vlgmr.msra.gmra.mxu1 %v945_v55  ;;  %611 = vmatmul.f32.gmra.mxu2 %v945_v55 }
 0x408   :  { %946 = vtanh.f32 %v688_v56  ;;  %760 = vmatpush.msra.mxu1 %v1444_v11 }
 0x40a   :  { %761 = vmatpush.msra.mxu1 %v1446_v12  ;;  %v609_v12 = vpop.f32.mrf.mxu2 }
 0x40c   :  { %762 = vmatpush.msra.mxu1 %v1450_v13  ;;  %v610_v13 = vadd.f32 %v1580_v40, %v609_v12 }
 0x40e   :  { %v947_v57 = vpop.eup %946  ;;  %763 = vmatpush.msra.mxu1 %v1456_v14 }
 0x40f   :  { %707 = vmatmul.f32.vlgmr.msrb.gmra.mxu1 %v947_v57 }
 0x410   :  { %764 = vmatpush.msra.mxu1 %v1462_v15 }
 0x412   :  { %765 = vmatpush.msra.mxu1 %v1469_v16 }
 0x414   :  { %766 = vmatpush.msra.mxu1 %v1482_v17  ;;  %v852_v17 = vld [vmem:[#allocation14 + $0x78] sm:$0xff] }
 0x415   :  { %857 = vmatpush.msra.mxu0 %v852_v17 }
 0x416   :  { %767 = vmatpush.msra.mxu1 %v1488_v18  ;;  %v851_v18 = vld [vmem:[#allocation14 + $0x70] sm:$0xff] }
 0x417   :  { %858 = vmatpush.msra.mxu0 %v851_v18 }
 0x418   :  { %768 = vmatpush.msra.mxu1 %v1492_v19  ;;  %v850_v19 = vld [vmem:[#allocation14 + $0x68] sm:$0xff] }
 0x419   :  { %859 = vmatpush.msra.mxu0 %v850_v19 }
 0x41a   :  { %769 = vmatpush.msra.mxu1 %v1497_v20  ;;  %v849_v20 = vld [vmem:[#allocation14 + $0x60] sm:$0xff] }
 0x41b   :  { %860 = vmatpush.msra.mxu0 %v849_v20 }
 0x41c   :  { %770 = vmatpush.msra.mxu1 %v1500_v21 }
 0x41e   :  { %771 = vmatpush.msra.mxu1 %v1510_v22  ;;  %v848_v22 = vld [vmem:[#allocation14 + $0x58] sm:$0xff] }
 0x41f   :  { %861 = vmatpush.msra.mxu0 %v848_v22 }
 0x420   :  { %772 = vmatpush.msra.mxu1 %v1516_v23  ;;  %v847_v23 = vld [vmem:[#allocation14 + $0x50] sm:$0xff] }
 0x421   :  { %862 = vmatpush.msra.mxu0 %v847_v23 }
 0x422   :  { %773 = vmatpush.msra.mxu1 %v1518_v24  ;;  %v846_v24 = vld [vmem:[#allocation14 + $0x48] sm:$0xff] }
 0x423   :  { %863 = vmatpush.msra.mxu0 %v846_v24 }
 0x424   :  { %774 = vmatpush.msra.mxu1 %v1523_v26 }
 0x425   :  { %864 = vmatpush.msra.mxu0 %v845_v25 }
 0x426   :  { %775 = vmatpush.msra.mxu1 %v1533_v27  ;;  %v844_v27 = vld [vmem:[#allocation14 + $0x38] sm:$0xff] }
 0x427   :  { %865 = vmatpush.msra.mxu0 %v844_v27 }
 0x429   :  { %866 = vmatpush.msra.mxu0 %v843_v28 }
 0x42b   :  { %867 = vmatpush.msra.mxu0 %v842_v29 }
 0x42d   :  { %868 = vmatpush.msra.mxu0 %v841_v33 }
 0x42f   :  { %869 = vmatpush.msra.mxu0 %v840_v36 }
 0x431   :  { %870 = vmatpush.msra.mxu0 %v839_v37 }
 0x433   :  { %871 = vmatpush.msra.mxu0 %v838_v38 }
 0x435   :  { %872 = vmatpush.msra.mxu0 %v837_v39 }
 0x484   :  { %v541_v59 = vpop.f32.mrf.mxu1 }
 0x485   :  { %v544_v60 = vadd.f32 %v541_v59, %v203_v58 }
 0x487   :  { %948 = vtanh.f32 %v544_v60 }
 0x48a   :  { %v612_v21 = vpop.f32.mrf.mxu2 }
 0x48b   :  { %v613_v30 = vadd.f32 %v1580_v40, %v612_v21 }
 0x48c   :  { %v708_v63 = vpop.f32.mrf.mxu1 }
 0x48d   :  { %v949_v0 = vpop.eup %948  ;;  %v711_v1 = vadd.f32 %v708_v63, %v601_v62 }
 0x48e   :  { %834 = vst [vmem:[#allocation17] sm:$0xff] %v949_v0  ;;  %614 = vmatmul.f32.gmra.mxu2 %v949_v0 }
 0x48f   :  { %950 = vtanh.f32 %v711_v1 }
 0x495   :  { %v951_v2 = vpop.eup %950 }
 0x496   :  { %730 = vmatmul.f32.vlgmr.msrb.gmra.mxu3 %v951_v2 }
 0x511   :  { %v615_v26 = vpop.f32.mrf.mxu2 }
 0x512   :  { %v616_v41 = vadd.f32 %v1580_v40, %v615_v26  ;;  %v929_v40 = vld [vmem:[%s1644_s8] ss:$0 sm:$0xff] }
 0x519   :  { %v731_v5 = vpop.f32.mrf.mxu3 }
 0x51a   :  { %v734_v6 = vadd.f32 %v731_v5, %v604_v4 }
 0x51c   :  { %952 = vtanh.f32 %v734_v6 }
 0x522   :  { %v953_v35 = vpop.eup %952 }
 0x523   :  { %753 = vmatmul.f32.vlgmr.msrb.gmra.mxu0 %v953_v35 }
 0x5a0   :  { %v754_v9 = vpop.f32.mrf.mxu0 }
 0x5a1   :  { %v757_v10 = vadd.f32 %v754_v9, %v607_v8 }
 0x5a3   :  { %954 = vtanh.f32 %v757_v10 }
 0x5a9   :  { %v955_v11 = vpop.eup %954 }
 0x5aa   :  { %776 = vmatmul.f32.vlgmr.msra.gmra.mxu1 %v955_v11 }
 0x627   :  { %v777_v14 = vpop.f32.mrf.mxu1 }
 0x628   :  { %v780_v15 = vadd.f32 %v777_v14, %v610_v13 }
 0x62a   :  { %956 = vtanh.f32 %v780_v15 }
 0x630   :  { %v957_v16 = vpop.eup %956 }
 0x631   :  { %799 = vmatmul.f32.vlgmr.msrb.gmra.mxu2 %v957_v16 }
 0x6b4   :  { %v800_v31 = vpop.f32.mrf.mxu2 }
 0x6b5   :  { %v803_v32 = vadd.f32 %v800_v31, %v613_v30 }
 0x6b7   :  { %958 = vtanh.f32 %v803_v32 }
 0x6bd   :  { %v959_v34 = vpop.eup %958 }
 0x6be   :  { %822 = vmatmul.f32.vlgmr.msra.gmra.mxu3 %v959_v34 }
 0x741   :  { %v823_v42 = vpop.f32.mrf.mxu3 }
 0x742   :  { %v826_v43 = vadd.f32 %v823_v42, %v616_v41 }
 0x744   :  { %960 = vtanh.f32 %v826_v43 }
 0x74a   :  { %v961_v44 = vpop.eup %960 }
 0x74b   :  { %835 = vst [vmem:[#allocation17 + $0x8] sm:$0xff] %v961_v44  ;;  %873 = vmatmul.f32.vlgmr.msra.gmra.mxu0 %v961_v44 }
 0x74c   :  { %901 = dma.vmem_to_hbm [thread:$0]  %s894_s24, 256, %s896_s1, [#allocation18], %s1167_s21, %s1167_s21, %s1168_s22  }
 0x7c8   :  { %v874_v45 = vpop.f32.mrf.mxu0 }
 0x7c9   :  { %v875_v46 = vadd.f32 %v929_v40, %v874_v45 }
 0x7cb   :  { %877 = vst [vmem:[#allocation16] sm:$0xff] %v875_v46 }
 0x7cc   :  { %888 = dma.vmem_to_hbm [thread:$0]  %s884_s29, 128, %s886_s0, [#allocation7]  }
 0x7cd   :  { %1162 = dma.done.wait [#allocation7], 128  }
 0x7ce   :  { %1163 = vsyncadd [#allocation7], 4294967168 }
 0x7cf   :  { %1164 = dma.done.wait [#allocation18], 256  }
 0x7d0   :  { %1165 = vsyncadd [#allocation18], 4294967040 }
 0x7d1   :  { %910 = vsyncpa [#allocation6], 1 }
 0x7d2   :  { %911 = vsyncpa [#allocation9], 1 }
 0x7d3   :  { %912 = vsyncpa [#allocation12], 1 }
 0x7d4   :  { %913 = vsyncpa [#allocation15], 1 }
 0x7d5   :  { %914 = vsyncpa [#allocation7], 1 }
 0x7d6   :  { %915 = vsyncpa [#allocation18], 1 }

</bundles_post_ra>
